<compile_context>
chip_gen: v7x
topology: tpu7x:2x2x1
jax: 0.10.0
libtpu: 0.0.40
codegen_flags: <defaults>
</compile_context>

<pallas_src>
import math
import functools

import jax
import jax.numpy as jnp
from jax.experimental import pallas as pl
from jax.experimental.pallas import tpu as pltpu


# ---------------------------------------------------------------------------
# Positional encoding (interleaved sin/cos per feature pair: sin,cos,sin,...)
# ---------------------------------------------------------------------------
def get_position_encoding(seq_len: int, num_features: int, n: float = 10000.0):
    pos = jnp.arange(seq_len, dtype=jnp.float32)[:, None]                 # (S, 1)
    i = jnp.arange(num_features // 2, dtype=jnp.float32)[None, :]         # (1, D/2)
    denom = jnp.power(n, 2.0 * i / num_features)
    angle = pos / denom                                                    # (S, D/2)
    pe = jnp.stack([jnp.sin(angle), jnp.cos(angle)], axis=-1)              # (S, D/2, 2)
    return pe.reshape(seq_len, num_features)                               # (S, D)


# ---------------------------------------------------------------------------
# In-kernel helpers
# ---------------------------------------------------------------------------
def _approx_recip(x):
    # pl.reciprocal lowers to the EUP (free slot next to exp); fall back to a
    # plain divide on older jax versions.
    if hasattr(pl, "reciprocal"):
        return pl.reciprocal(x, approx=True)
    return 1.0 / x


def _layernorm(x, gamma, beta, eps=1e-5):
    mu = jnp.mean(x, axis=-1, keepdims=True)
    var = jnp.mean((x - mu) * (x - mu), axis=-1, keepdims=True)
    return (x - mu) * jax.lax.rsqrt(var + eps) * gamma + beta


def _softmax_lastdim(s):
    s = s - jnp.max(s, axis=-1, keepdims=True)
    p = jnp.exp(s)
    return p * _approx_recip(jnp.sum(p, axis=-1, keepdims=True))


def _split_heads(t, B, S, H, hd):
    # (B*S, H*hd) -> (H*B, S, hd); result batch index is h*B + b.
    parts = [t[:, h * hd:(h + 1) * hd].reshape(B, S, hd) for h in range(H)]
    return jnp.concatenate(parts, axis=0)


def _merge_heads(t, B, S, H, hd):
    # (H*B, S, hd) -> (B*S, H*hd)
    parts = [t[h * B:(h + 1) * B].reshape(B * S, hd) for h in range(H)]
    return jnp.concatenate(parts, axis=-1)


def _mha(q, k, v, B, Sq, Sk, H, hd):
    """Multi-head attention; q: (B*Sq, D) f32, k/v: (B*Sk, D) f32 -> (B*Sq, D) f32.

    Heads are batched through one dot_general (batch dim = H*B) instead of an
    unrolled per-head matmul loop; MXU operands are bf16, accumulation f32.
    """
    scale = 1.0 / math.sqrt(hd)
    qh = _split_heads(q * scale, B, Sq, H, hd).astype(jnp.bfloat16)   # (H*B, Sq, hd)
    kh = _split_heads(k, B, Sk, H, hd).astype(jnp.bfloat16)           # (H*B, Sk, hd)
    vh = _split_heads(v, B, Sk, H, hd).astype(jnp.bfloat16)           # (H*B, Sk, hd)
    s = jnp.einsum('bqd,bkd->bqk', qh, kh,
                   preferred_element_type=jnp.float32)                # (H*B, Sq, Sk)
    p = _softmax_lastdim(s)
    ctx = jnp.einsum('bqk,bkd->bqd', p.astype(jnp.bfloat16), vh,
                     preferred_element_type=jnp.float32)              # (H*B, Sq, hd)
    return _merge_heads(ctx, B, Sq, H, hd)                            # (B*Sq, D)


# ---------------------------------------------------------------------------
# Fused encoder stack kernel (grid = (num_layers,))
# ---------------------------------------------------------------------------
def _encoder_stack_kernel(x_ref, pe_ref,
                          wqkv_ref, bqkv_ref, wo_ref, bo_ref,
                          g1_ref, be1_ref,
                          w1_ref, b1_ref, w2_ref, b2_ref,
                          g2_ref, be2_ref,
                          o_ref, h_ref, *, num_heads):
    l = pl.program_id(0)
    B, S, D = x_ref.shape
    M = B * S
    H = num_heads
    hd = D // H

    @pl.when(l == 0)
    def _():
        # Positional-encoding add folded into the first grid step.
        h_ref[...] = (x_ref[...].astype(jnp.float32) +
                      pe_ref[...].astype(jnp.float32)).reshape(M, D)

    x = h_ref[...]                              # (M, D) f32, VMEM-resident
    xb = x.astype(jnp.bfloat16)

    # Fused QKV projection: one (M, D) @ (D, 3D) MXU pass.
    qkv = jnp.dot(xb, wqkv_ref[0], preferred_element_type=jnp.float32) + bqkv_ref[0]
    attn = _mha(qkv[:, :D], qkv[:, D:2 * D], qkv[:, 2 * D:], B, S, S, H, hd)
    attn = jnp.dot(attn.astype(jnp.bfloat16), wo_ref[0],
                   preferred_element_type=jnp.float32) + bo_ref[0]
    # TODO(synk): dropout layers are identity here (eval-mode forward).

    h1 = _layernorm(x + attn, g1_ref[0], be1_ref[0])

    ff = jnp.dot(h1.astype(jnp.bfloat16), w1_ref[0],
                 preferred_element_type=jnp.float32) + b1_ref[0]
    ff = jnp.maximum(ff, 0.0)
    ff = jnp.dot(ff.astype(jnp.bfloat16), w2_ref[0],
                 preferred_element_type=jnp.float32) + b2_ref[0]

    h2 = _layernorm(h1 + ff, g2_ref[0], be2_ref[0])
    h_ref[...] = h2
    o_ref[...] = h2.reshape(B, S, D).astype(o_ref.dtype)


# ---------------------------------------------------------------------------
# Fused decoder stack kernel (grid = (num_layers,)), final Linear + softmax
# folded into the last grid step.
# ---------------------------------------------------------------------------
def _decoder_stack_kernel(tgt_ref, pe_ref, enc_ref,
                          wqkv_s_ref, bqkv_s_ref, wo_s_ref, bo_s_ref, g1_ref, be1_ref,
                          wq_c_ref, bq_c_ref, wkv_c_ref, bkv_c_ref, wo_c_ref, bo_c_ref,
                          g2_ref, be2_ref,
                          w1_ref, b1_ref, w2_ref, b2_ref, g3_ref, be3_ref,
                          wlin_ref, blin_ref,
                          o_ref, h_ref, *, num_heads):
    l = pl.program_id(0)
    B, St, D = tgt_ref.shape
    Se = enc_ref.shape[1]
    M = B * St
    H = num_heads
    hd = D // H

    @pl.when(l == 0)
    def _():
        h_ref[...] = (tgt_ref[...].astype(jnp.float32) +
                      pe_ref[...].astype(jnp.float32)).reshape(M, D)

    t = h_ref[...]                              # (M, D) f32, VMEM-resident
    tb = t.astype(jnp.bfloat16)

    # ----- self attention (fused QKV) -----
    # TODO(synk): DecoderBlock source is not in the spec; a standard unmasked
    # self-attn + cross-attn + FFN block (each with add & LayerNorm) is assumed.
    qkv = jnp.dot(tb, wqkv_s_ref[0], preferred_element_type=jnp.float32) + bqkv_s_ref[0]
    sa = _mha(qkv[:, :D], qkv[:, D:2 * D], qkv[:, 2 * D:], B, St, St, H, hd)
    sa = jnp.dot(sa.astype(jnp.bfloat16), wo_s_ref[0],
                 preferred_element_type=jnp.float32) + bo_s_ref[0]
    t1 = _layernorm(t + sa, g1_ref[0], be1_ref[0])

    # ----- cross attention over encoder output (fused KV) -----
    encb = enc_ref[...].reshape(B * Se, D).astype(jnp.bfloat16)
    qc = jnp.dot(t1.astype(jnp.bfloat16), wq_c_ref[0],
                 preferred_element_type=jnp.float32) + bq_c_ref[0]
    kvc = jnp.dot(encb, wkv_c_ref[0],
                  preferred_element_type=jnp.float32) + bkv_c_ref[0]
    ca = _mha(qc, kvc[:, :D], kvc[:, D:], B, St, Se, H, hd)
    ca = jnp.dot(ca.astype(jnp.bfloat16), wo_c_ref[0],
                 preferred_element_type=jnp.float32) + bo_c_ref[0]
    t2 = _layernorm(t1 + ca, g2_ref[0], be2_ref[0])

    # ----- feed forward -----
    ff = jnp.dot(t2.astype(jnp.bfloat16), w1_ref[0],
                 preferred_element_type=jnp.float32) + b1_ref[0]
    ff = jnp.maximum(ff, 0.0)
    ff = jnp.dot(ff.astype(jnp.bfloat16), w2_ref[0],
                 preferred_element_type=jnp.float32) + b2_ref[0]
    t3 = _layernorm(t2 + ff, g3_ref[0], be3_ref[0])

    h_ref[...] = t3

    # ----- final Linear + softmax, only on the last layer step -----
    @pl.when(l == pl.num_programs(0) - 1)
    def _():
        logits = jnp.dot(t3.astype(jnp.bfloat16), wlin_ref[...],
                         preferred_element_type=jnp.float32) + blin_ref[...]
        probs = _softmax_lastdim(logits)
        o_ref[...] = probs.reshape(B, St, D).astype(o_ref.dtype)


# ---------------------------------------------------------------------------
# BlockSpec helpers
# ---------------------------------------------------------------------------
def _stacked_spec(p):
    """Per-layer block of a (L, ...) stacked parameter: block (1, ...), index (l, 0, ...)."""
    nd = p.ndim - 1
    blk = (1,) + p.shape[1:]
    return pl.BlockSpec(blk, lambda l, _nd=nd: (l,) + (0,) * _nd)


def _const_spec(shape):
    """Whole-array block that is resident across the layer grid (fetched once)."""
    nd = len(shape)
    return pl.BlockSpec(tuple(shape), lambda l, _nd=nd: (0,) * _nd)


_ENC_ORDER = ('wqkv', 'bqkv', 'wo', 'bo', 'g1', 'be1',
              'w1', 'b1', 'w2', 'b2', 'g2', 'be2')
_DEC_ORDER = ('wqkv_s', 'bqkv_s', 'wo_s', 'bo_s', 'g1', 'be1',
              'wq_c', 'bq_c', 'wkv_c', 'bkv_c', 'wo_c', 'bo_c', 'g2', 'be2',
              'w1', 'b1', 'w2', 'b2', 'g3', 'be3')


# ---------------------------------------------------------------------------
# Wrappers
# ---------------------------------------------------------------------------
def encoder_forward(x, params, num_heads):
    B, S, D = x.shape
    L = params['wqkv'].shape[0]
    pe = jnp.broadcast_to(get_position_encoding(S, D).astype(x.dtype)[None], (B, S, D))
    flat = [params[n] for n in _ENC_ORDER]

    in_specs = ([_const_spec((B, S, D)),      # x (resident)
                 _const_spec((B, S, D))]      # positional encoding (resident)
                + [_stacked_spec(p) for p in flat])

    kern = functools.partial(_encoder_stack_kernel, num_heads=num_heads)
    return pl.pallas_call(
        kern,
        out_shape=jax.ShapeDtypeStruct((B, S, D), x.dtype),
        grid_spec=pltpu.PrefetchScalarGridSpec(
            num_scalar_prefetch=0,
            grid=(L,),
            in_specs=in_specs,
            out_specs=_const_spec((B, S, D)),
            scratch_shapes=[pltpu.VMEM((B * S, D), jnp.float32)]),
        compiler_params=pltpu.CompilerParams(dimension_semantics=("arbitrary",)),
    )(x, pe, *flat)


def decoder_forward(tgt, encoded, params, final_params, num_heads):
    B, St, D = tgt.shape
    Se = encoded.shape[1]
    L = params['wqkv_s'].shape[0]
    pe = jnp.broadcast_to(get_position_encoding(St, D).astype(tgt.dtype)[None], (B, St, D))
    flat = [params[n] for n in _DEC_ORDER]

    in_specs = ([_const_spec((B, St, D)),     # target (resident)
                 _const_spec((B, St, D)),     # positional encoding (resident)
                 _const_spec((B, Se, D))]     # encoder output (resident)
                + [_stacked_spec(p) for p in flat]
                + [_const_spec(final_params['wlin'].shape),
                   _const_spec(final_params['blin'].shape)])

    kern = functools.partial(_decoder_stack_kernel, num_heads=num_heads)
    return pl.pallas_call(
        kern,
        out_shape=jax.ShapeDtypeStruct((B, St, D), tgt.dtype),
        grid_spec=pltpu.PrefetchScalarGridSpec(
            num_scalar_prefetch=0,
            grid=(L,),
            in_specs=in_specs,
            out_specs=_const_spec((B, St, D)),
            scratch_shapes=[pltpu.VMEM((B * St, D), jnp.float32)]),
        compiler_params=pltpu.CompilerParams(dimension_semantics=("arbitrary",)),
    )(tgt, pe, encoded, *flat, final_params['wlin'], final_params['blin'])


def tiny_transformer_forward(src, tgt, enc_params, dec_params, final_params, num_heads):
    encoded = encoder_forward(src, enc_params, num_heads)
    return decoder_forward(tgt, encoded, dec_params, final_params, num_heads)


# ---------------------------------------------------------------------------
# Parameter init (matmul weights stored bf16 for MXU / halved DMA; biases and
# LayerNorm affine params stay f32).
# ---------------------------------------------------------------------------
def init_encoder_params(key, L, D, F):
    ks = jax.random.split(key, 4)
    s, bf = 0.02, jnp.bfloat16
    return {
        'wqkv': (jax.random.normal(ks[0], (L, D, 3 * D)) * s).astype(bf),
        'bqkv': jnp.zeros((L, 1, 3 * D), jnp.float32),
        'wo': (jax.random.normal(ks[1], (L, D, D)) * s).astype(bf),
        'bo': jnp.zeros((L, 1, D), jnp.float32),
        'g1': jnp.ones((L, 1, D), jnp.float32),
        'be1': jnp.zeros((L, 1, D), jnp.float32),
        'w1': (jax.random.normal(ks[2], (L, D, F)) * s).astype(bf),
        'b1': jnp.zeros((L, 1, F), jnp.float32),
        'w2': (jax.random.normal(ks[3], (L, F, D)) * s).astype(bf),
        'b2': jnp.zeros((L, 1, D), jnp.float32),
        'g2': jnp.ones((L, 1, D), jnp.float32),
        'be2': jnp.zeros((L, 1, D), jnp.float32),
    }


def init_decoder_params(key, L, D, F):
    ks = jax.random.split(key, 8)
    s, bf = 0.02, jnp.bfloat16
    layer = {
        'wqkv_s': (jax.random.normal(ks[0], (L, D, 3 * D)) * s).astype(bf),
        'bqkv_s': jnp.zeros((L, 1, 3 * D), jnp.float32),
        'wo_s': (jax.random.normal(ks[1], (L, D, D)) * s).astype(bf),
        'bo_s': jnp.zeros((L, 1, D), jnp.float32),
        'g1': jnp.ones((L, 1, D), jnp.float32),
        'be1': jnp.zeros((L, 1, D), jnp.float32),
        'wq_c': (jax.random.normal(ks[2], (L, D, D)) * s).astype(bf),
        'bq_c': jnp.zeros((L, 1, D), jnp.float32),
        'wkv_c': (jax.random.normal(ks[3], (L, D, 2 * D)) * s).astype(bf),
        'bkv_c': jnp.zeros((L, 1, 2 * D), jnp.float32),
        'wo_c': (jax.random.normal(ks[4], (L, D, D)) * s).astype(bf),
        'bo_c': jnp.zeros((L, 1, D), jnp.float32),
        'g2': jnp.ones((L, 1, D), jnp.float32),
        'be2': jnp.zeros((L, 1, D), jnp.float32),
        'w1': (jax.random.normal(ks[5], (L, D, F)) * s).astype(bf),
        'b1': jnp.zeros((L, 1, F), jnp.float32),
        'w2': (jax.random.normal(ks[6], (L, F, D)) * s).astype(bf),
        'b2': jnp.zeros((L, 1, D), jnp.float32),
        'g3': jnp.ones((L, 1, D), jnp.float32),
        'be3': jnp.zeros((L, 1, D), jnp.float32),
    }
    final = {
        'wlin': (jax.random.normal(ks[7], (D, D)) * s).astype(bf),
        'blin': jnp.zeros((1, D), jnp.float32),
    }
    return layer, final


# ---------------------------------------------------------------------------
if __name__ == "__main__":
    # Small shapes consistent with the module: (B, S, D) = (2, 8, 128).
    num_enc_layers, num_dec_layers = 2, 2
    num_features, num_heads, dim_feedforward = 128, 4, 256
    batch, seq_src, seq_tgt = 2, 8, 8

    key = jax.random.PRNGKey(0)
    k_src, k_tgt, k_enc, k_dec = jax.random.split(key, 4)
    src = jax.random.normal(k_src, (batch, seq_src, num_features), jnp.float32)
    tgt = jax.random.normal(k_tgt, (batch, seq_tgt, num_features), jnp.float32)

    enc_params = init_encoder_params(k_enc, num_enc_layers, num_features, dim_feedforward)
    dec_params, final_params = init_decoder_params(k_dec, num_dec_layers,
                                                   num_features, dim_feedforward)

    y = tiny_transformer_forward(src, tgt, enc_params, dec_params, final_params, num_heads)
    y = jax.block_until_ready(y)
    assert y.shape == (batch, seq_tgt, num_features)
    print("KERNEL_OK")
</pallas_src>

<mosaic_0001>
module attributes {stable_mosaic.version = 11 : i64} {
  func.func @_encoder_stack_kernel(%arg0: i32, %arg1: memref<2x8x128xf32, #tpu.memory_space<vmem>>, %arg2: memref<2x8x128xf32, #tpu.memory_space<vmem>>, %arg3: memref<1x128x384xbf16, #tpu.memory_space<vmem>>, %arg4: memref<1x1x384xf32, #tpu.memory_space<vmem>>, %arg5: memref<1x128x128xbf16, #tpu.memory_space<vmem>>, %arg6: memref<1x1x128xf32, #tpu.memory_space<vmem>>, %arg7: memref<1x1x128xf32, #tpu.memory_space<vmem>>, %arg8: memref<1x1x128xf32, #tpu.memory_space<vmem>>, %arg9: memref<1x128x256xbf16, #tpu.memory_space<vmem>>, %arg10: memref<1x1x256xf32, #tpu.memory_space<vmem>>, %arg11: memref<1x256x128xbf16, #tpu.memory_space<vmem>>, %arg12: memref<1x1x128xf32, #tpu.memory_space<vmem>>, %arg13: memref<1x1x128xf32, #tpu.memory_space<vmem>>, %arg14: memref<1x1x128xf32, #tpu.memory_space<vmem>>, %arg15: memref<2x8x128xf32, #tpu.memory_space<vmem>>, %arg16: memref<16x128xf32, #tpu.memory_space<vmem>>) attributes {dimension_semantics = [#tpu.dimension_semantics<arbitrary>], iteration_bounds = array<i64: 2>, scalar_prefetch = 0 : i64, scratch_operands = 1 : i64, tpu.core_type = #tpu.core_type<tc>, window_params = [{pipeline_mode = #tpu.pipeline_mode<synchronous>, transform_indices = @transform_0, window_bounds = array<i64: 2, 8, 128>}, {pipeline_mode = #tpu.pipeline_mode<synchronous>, transform_indices = @transform_1, window_bounds = array<i64: 2, 8, 128>}, {transform_indices = @transform_2, window_bounds = array<i64: 1, 128, 384>}, {transform_indices = @transform_3, window_bounds = array<i64: 1, 1, 384>}, {transform_indices = @transform_4, window_bounds = array<i64: 1, 128, 128>}, {transform_indices = @transform_5, window_bounds = array<i64: 1, 1, 128>}, {transform_indices = @transform_6, window_bounds = array<i64: 1, 1, 128>}, {transform_indices = @transform_7, window_bounds = array<i64: 1, 1, 128>}, {transform_indices = @transform_8, window_bounds = array<i64: 1, 128, 256>}, {transform_indices = @transform_9, window_bounds = array<i64: 1, 1, 256>}, {transform_indices = @transform_10, window_bounds = array<i64: 1, 256, 128>}, {transform_indices = @transform_11, window_bounds = array<i64: 1, 1, 128>}, {transform_indices = @transform_12, window_bounds = array<i64: 1, 1, 128>}, {transform_indices = @transform_13, window_bounds = array<i64: 1, 1, 128>}, {pipeline_mode = #tpu.pipeline_mode<synchronous>, transform_indices = @transform_14, window_bounds = array<i64: 2, 8, 128>}]} {
    %c0_i32 = arith.constant 0 : i32
    %0 = arith.cmpi eq, %arg0, %c0_i32 : i32
    %1 = arith.extui %0 : i1 to i32
    %c0_i32_0 = arith.constant 0 : i32
    %2 = arith.cmpi ne, %1, %c0_i32_0 : i32
    scf.if %2 {
      %c0_62 = arith.constant 0 : index
      %c0_63 = arith.constant 0 : index
      %c0_64 = arith.constant 0 : index
      %156 = vector.load %arg1[%c0_62, %c0_63, %c0_64] : memref<2x8x128xf32, #tpu.memory_space<vmem>>, vector<2x8x128xf32>
      %c0_65 = arith.constant 0 : index
      %c0_66 = arith.constant 0 : index
      %c0_67 = arith.constant 0 : index
      %157 = vector.load %arg2[%c0_65, %c0_66, %c0_67] : memref<2x8x128xf32, #tpu.memory_space<vmem>>, vector<2x8x128xf32>
      %158 = arith.addf %156, %157 : vector<2x8x128xf32>
      %159 = vector.shape_cast %158 : vector<2x8x128xf32> to vector<16x128xf32>
      %c0_68 = arith.constant 0 : index
      %c0_69 = arith.constant 0 : index
      %160 = vector.load %arg16[%c0_68, %c0_69] : memref<16x128xf32, #tpu.memory_space<vmem>>, vector<16x128xf32>
      tpu.vector_store %arg16[%c0_68, %c0_69], %159 {strides = array<i32>} : memref<16x128xf32, #tpu.memory_space<vmem>>, vector<16x128xf32>,
    } else {
    }
    %c0 = arith.constant 0 : index
    %c0_1 = arith.constant 0 : index
    %3 = vector.load %arg16[%c0, %c0_1] : memref<16x128xf32, #tpu.memory_space<vmem>>, vector<16x128xf32>
    %4 = arith.truncf %3 : vector<16x128xf32> to vector<16x128xbf16>
    %c0_2 = arith.constant 0 : index
    %c0_3 = arith.constant 0 : index
    %c0_4 = arith.constant 0 : index
    %5 = vector.load %arg3[%c0_2, %c0_3, %c0_4] : memref<1x128x384xbf16, #tpu.memory_space<vmem>>, vector<1x128x384xbf16>
    %6 = vector.shape_cast %5 : vector<1x128x384xbf16> to vector<128x384xbf16>
    %cst = arith.constant dense<0.000000e+00> : vector<16x384xf32>
    %7 = tpu.matmul %4, %6, %cst {dimension_numbers = #tpu.dot_dimension_numbers<[1], [0], [0], [1], [0, 0, 1, 1], [], []>} : vector<16x128xbf16>, vector<128x384xbf16>, vector<16x384xf32> -> vector<16x384xf32>
    %c0_5 = arith.constant 0 : index
    %c0_6 = arith.constant 0 : index
    %c0_7 = arith.constant 0 : index
    %8 = vector.load %arg4[%c0_5, %c0_6, %c0_7] : memref<1x1x384xf32, #tpu.memory_space<vmem>>, vector<1x1x384xf32>
    %9 = vector.shape_cast %8 : vector<1x1x384xf32> to vector<1x384xf32>
    %10 = vector.broadcast %9 : vector<1x384xf32> to vector<16x384xf32>
    %11 = arith.addf %7, %10 : vector<16x384xf32>
    %12 = vector.extract_strided_slice %11 {offsets = [0, 0], sizes = [16, 128], strides = [1, 1]} : vector<16x384xf32> to vector<16x128xf32>
    %13 = vector.extract_strided_slice %11 {offsets = [0, 128], sizes = [16, 128], strides = [1, 1]} : vector<16x384xf32> to vector<16x128xf32>
    %14 = vector.extract_strided_slice %11 {offsets = [0, 256], sizes = [16, 128], strides = [1, 1]} : vector<16x384xf32> to vector<16x128xf32>
    %cst_8 = arith.constant 0.176776692 : f32
    %15 = vector.broadcast %cst_8 : f32 to vector<16x128xf32>
    %16 = arith.mulf %12, %15 : vector<16x128xf32>
    %17 = vector.extract_strided_slice %16 {offsets = [0, 0], sizes = [16, 32], strides = [1, 1]} : vector<16x128xf32> to vector<16x32xf32>
    %18 = vector.shape_cast %17 : vector<16x32xf32> to vector<2x8x32xf32>
    %19 = vector.extract_strided_slice %16 {offsets = [0, 32], sizes = [16, 32], strides = [1, 1]} : vector<16x128xf32> to vector<16x32xf32>
    %20 = vector.shape_cast %19 : vector<16x32xf32> to vector<2x8x32xf32>
    %21 = vector.extract_strided_slice %16 {offsets = [0, 64], sizes = [16, 32], strides = [1, 1]} : vector<16x128xf32> to vector<16x32xf32>
    %22 = vector.shape_cast %21 : vector<16x32xf32> to vector<2x8x32xf32>
    %23 = vector.extract_strided_slice %16 {offsets = [0, 96], sizes = [16, 32], strides = [1, 1]} : vector<16x128xf32> to vector<16x32xf32>
    %24 = vector.shape_cast %23 : vector<16x32xf32> to vector<2x8x32xf32>
    %25 = tpu.concatenate %18, %20, %22, %24 in 0 : vector<2x8x32xf32>, vector<2x8x32xf32>, vector<2x8x32xf32>, vector<2x8x32xf32> -> vector<8x8x32xf32>
    %26 = arith.truncf %25 : vector<8x8x32xf32> to vector<8x8x32xbf16>
    %27 = vector.extract_strided_slice %13 {offsets = [0, 0], sizes = [16, 32], strides = [1, 1]} : vector<16x128xf32> to vector<16x32xf32>
    %28 = vector.shape_cast %27 : vector<16x32xf32> to vector<2x8x32xf32>
    %29 = vector.extract_strided_slice %13 {offsets = [0, 32], sizes = [16, 32], strides = [1, 1]} : vector<16x128xf32> to vector<16x32xf32>
    %30 = vector.shape_cast %29 : vector<16x32xf32> to vector<2x8x32xf32>
    %31 = vector.extract_strided_slice %13 {offsets = [0, 64], sizes = [16, 32], strides = [1, 1]} : vector<16x128xf32> to vector<16x32xf32>
    %32 = vector.shape_cast %31 : vector<16x32xf32> to vector<2x8x32xf32>
    %33 = vector.extract_strided_slice %13 {offsets = [0, 96], sizes = [16, 32], strides = [1, 1]} : vector<16x128xf32> to vector<16x32xf32>
    %34 = vector.shape_cast %33 : vector<16x32xf32> to vector<2x8x32xf32>
    %35 = tpu.concatenate %28, %30, %32, %34 in 0 : vector<2x8x32xf32>, vector<2x8x32xf32>, vector<2x8x32xf32>, vector<2x8x32xf32> -> vector<8x8x32xf32>
    %36 = arith.truncf %35 : vector<8x8x32xf32> to vector<8x8x32xbf16>
    %37 = vector.extract_strided_slice %14 {offsets = [0, 0], sizes = [16, 32], strides = [1, 1]} : vector<16x128xf32> to vector<16x32xf32>
    %38 = vector.shape_cast %37 : vector<16x32xf32> to vector<2x8x32xf32>
    %39 = vector.extract_strided_slice %14 {offsets = [0, 32], sizes = [16, 32], strides = [1, 1]} : vector<16x128xf32> to vector<16x32xf32>
    %40 = vector.shape_cast %39 : vector<16x32xf32> to vector<2x8x32xf32>
    %41 = vector.extract_strided_slice %14 {offsets = [0, 64], sizes = [16, 32], strides = [1, 1]} : vector<16x128xf32> to vector<16x32xf32>
    %42 = vector.shape_cast %41 : vector<16x32xf32> to vector<2x8x32xf32>
    %43 = vector.extract_strided_slice %14 {offsets = [0, 96], sizes = [16, 32], strides = [1, 1]} : vector<16x128xf32> to vector<16x32xf32>
    %44 = vector.shape_cast %43 : vector<16x32xf32> to vector<2x8x32xf32>
    %45 = tpu.concatenate %38, %40, %42, %44 in 0 : vector<2x8x32xf32>, vector<2x8x32xf32>, vector<2x8x32xf32>, vector<2x8x32xf32> -> vector<8x8x32xf32>
    %46 = arith.truncf %45 : vector<8x8x32xf32> to vector<8x8x32xbf16>
    "tpu.trace_start"() <{level = 10 : i32, message = "bqd,bkd->bqk"}> : () -> ()
    %cst_9 = arith.constant dense<0.000000e+00> : vector<8x8x8xf32>
    %47 = tpu.matmul %26, %36, %cst_9 {dimension_numbers = #tpu.dot_dimension_numbers<[2], [2], [1], [1], [0, 0, 0, 1, 1, 1], [0], [0]>} : vector<8x8x32xbf16>, vector<8x8x32xbf16>, vector<8x8x8xf32> -> vector<8x8x8xf32>
    "tpu.trace_stop"() : () -> ()
    %cst_10 = arith.constant dense<0xFF800000> : vector<8x8xf32>
    %48 = vector.multi_reduction <maximumf>, %47, %cst_10 [2] : vector<8x8x8xf32> to vector<8x8xf32>
    %49 = vector.shape_cast %48 : vector<8x8xf32> to vector<8x8x1xf32>
    %50 = vector.broadcast %49 : vector<8x8x1xf32> to vector<8x8x8xf32>
    %51 = arith.subf %47, %50 : vector<8x8x8xf32>
    %52 = math.exp %51 : vector<8x8x8xf32>
    %cst_11 = arith.constant dense<0.000000e+00> : vector<8x8xf32>
    %53 = vector.multi_reduction <add>, %52, %cst_11 [2] : vector<8x8x8xf32> to vector<8x8xf32>
    %54 = vector.shape_cast %53 : vector<8x8xf32> to vector<8x8x1xf32>
    %55 = tpu.reciprocal %54 {approx = true} : vector<8x8x1xf32> -> vector<8x8x1xf32>
    %56 = vector.broadcast %55 : vector<8x8x1xf32> to vector<8x8x8xf32>
    %57 = arith.mulf %52, %56 : vector<8x8x8xf32>
    %58 = arith.truncf %57 : vector<8x8x8xf32> to vector<8x8x8xbf16>
    "tpu.trace_start"() <{level = 10 : i32, message = "bqk,bkd->bqd"}> : () -> ()
    %cst_12 = arith.constant dense<0.000000e+00> : vector<8x8x32xf32>
    %59 = tpu.matmul %58, %46, %cst_12 {dimension_numbers = #tpu.dot_dimension_numbers<[2], [1], [1], [2], [0, 0, 0, 1, 1, 2], [0], [0]>} : vector<8x8x8xbf16>, vector<8x8x32xbf16>, vector<8x8x32xf32> -> vector<8x8x32xf32>
    "tpu.trace_stop"() : () -> ()
    %60 = vector.extract_strided_slice %59 {offsets = [0, 0, 0], sizes = [2, 8, 32], strides = [1, 1, 1]} : vector<8x8x32xf32> to vector<2x8x32xf32>
    %61 = vector.shape_cast %60 : vector<2x8x32xf32> to vector<16x32xf32>
    %62 = vector.extract_strided_slice %59 {offsets = [2, 0, 0], sizes = [2, 8, 32], strides = [1, 1, 1]} : vector<8x8x32xf32> to vector<2x8x32xf32>
    %63 = vector.shape_cast %62 : vector<2x8x32xf32> to vector<16x32xf32>
    %64 = vector.extract_strided_slice %59 {offsets = [4, 0, 0], sizes = [2, 8, 32], strides = [1, 1, 1]} : vector<8x8x32xf32> to vector<2x8x32xf32>
    %65 = vector.shape_cast %64 : vector<2x8x32xf32> to vector<16x32xf32>
    %66 = vector.extract_strided_slice %59 {offsets = [6, 0, 0], sizes = [2, 8, 32], strides = [1, 1, 1]} : vector<8x8x32xf32> to vector<2x8x32xf32>
    %67 = vector.shape_cast %66 : vector<2x8x32xf32> to vector<16x32xf32>
    %68 = tpu.concatenate %61, %63, %65, %67 in 1 : vector<16x32xf32>, vector<16x32xf32>, vector<16x32xf32>, vector<16x32xf32> -> vector<16x128xf32>
    %69 = arith.truncf %68 : vector<16x128xf32> to vector<16x128xbf16>
    %c0_13 = arith.constant 0 : index
    %c0_14 = arith.constant 0 : index
    %c0_15 = arith.constant 0 : index
    %70 = vector.load %arg5[%c0_13, %c0_14, %c0_15] : memref<1x128x128xbf16, #tpu.memory_space<vmem>>, vector<1x128x128xbf16>
    %71 = vector.shape_cast %70 : vector<1x128x128xbf16> to vector<128x128xbf16>
    %cst_16 = arith.constant dense<0.000000e+00> : vector<16x128xf32>
    %72 = tpu.matmul %69, %71, %cst_16 {dimension_numbers = #tpu.dot_dimension_numbers<[1], [0], [0], [1], [0, 0, 1, 1], [], []>} : vector<16x128xbf16>, vector<128x128xbf16>, vector<16x128xf32> -> vector<16x128xf32>
    %c0_17 = arith.constant 0 : index
    %c0_18 = arith.constant 0 : index
    %c0_19 = arith.constant 0 : index
    %73 = vector.load %arg6[%c0_17, %c0_18, %c0_19] : memref<1x1x128xf32, #tpu.memory_space<vmem>>, vector<1x1x128xf32>
    %74 = vector.shape_cast %73 : vector<1x1x128xf32> to vector<1x128xf32>
    %75 = vector.broadcast %74 : vector<1x128xf32> to vector<16x128xf32>
    %76 = arith.addf %72, %75 : vector<16x128xf32>
    %77 = arith.addf %3, %76 : vector<16x128xf32>
    %c0_20 = arith.constant 0 : index
    %c0_21 = arith.constant 0 : index
    %c0_22 = arith.constant 0 : index
    %78 = vector.load %arg7[%c0_20, %c0_21, %c0_22] : memref<1x1x128xf32, #tpu.memory_space<vmem>>, vector<1x1x128xf32>
    %79 = vector.shape_cast %78 : vector<1x1x128xf32> to vector<1x128xf32>
    %c0_23 = arith.constant 0 : index
    %c0_24 = arith.constant 0 : index
    %c0_25 = arith.constant 0 : index
    %80 = vector.load %arg8[%c0_23, %c0_24, %c0_25] : memref<1x1x128xf32, #tpu.memory_space<vmem>>, vector<1x1x128xf32>
    %81 = vector.shape_cast %80 : vector<1x1x128xf32> to vector<1x128xf32>
    %cst_26 = arith.constant dense<0.000000e+00> : vector<16xf32>
    %82 = vector.multi_reduction <add>, %77, %cst_26 [1] : vector<16x128xf32> to vector<16xf32>
    %83 = vector.shape_cast %82 : vector<16xf32> to vector<16x1xf32>
    %cst_27 = arith.constant 1.280000e+02 : f32
    %84 = vector.broadcast %cst_27 : f32 to vector<16x1xf32>
    %85 = arith.divf %83, %84 : vector<16x1xf32>
    %86 = vector.broadcast %85 : vector<16x1xf32> to vector<16x128xf32>
    %87 = arith.subf %77, %86 : vector<16x128xf32>
    %88 = vector.broadcast %85 : vector<16x1xf32> to vector<16x128xf32>
    %89 = arith.subf %77, %88 : vector<16x128xf32>
    %90 = arith.mulf %87, %89 : vector<16x128xf32>
    %cst_28 = arith.constant dense<0.000000e+00> : vector<16xf32>
    %91 = vector.multi_reduction <add>, %90, %cst_28 [1] : vector<16x128xf32> to vector<16xf32>
    %92 = vector.shape_cast %91 : vector<16xf32> to vector<16x1xf32>
    %cst_29 = arith.constant 1.280000e+02 : f32
    %93 = vector.broadcast %cst_29 : f32 to vector<16x1xf32>
    %94 = arith.divf %92, %93 : vector<16x1xf32>
    %95 = vector.broadcast %85 : vector<16x1xf32> to vector<16x128xf32>
    %96 = arith.subf %77, %95 : vector<16x128xf32>
    %cst_30 = arith.constant 9.99999974E-6 : f32
    %97 = vector.broadcast %cst_30 : f32 to vector<16x1xf32>
    %98 = arith.addf %94, %97 : vector<16x1xf32>
    %99 = math.rsqrt %98 : vector<16x1xf32>
    %100 = vector.broadcast %99 : vector<16x1xf32> to vector<16x128xf32>
    %101 = arith.mulf %96, %100 : vector<16x128xf32>
    %102 = vector.broadcast %79 : vector<1x128xf32> to vector<16x128xf32>
    %103 = arith.mulf %101, %102 : vector<16x128xf32>
    %104 = vector.broadcast %81 : vector<1x128xf32> to vector<16x128xf32>
    %105 = arith.addf %103, %104 : vector<16x128xf32>
    %106 = arith.truncf %105 : vector<16x128xf32> to vector<16x128xbf16>
    %c0_31 = arith.constant 0 : index
    %c0_32 = arith.constant 0 : index
    %c0_33 = arith.constant 0 : index
    %107 = vector.load %arg9[%c0_31, %c0_32, %c0_33] : memref<1x128x256xbf16, #tpu.memory_space<vmem>>, vector<1x128x256xbf16>
    %108 = vector.shape_cast %107 : vector<1x128x256xbf16> to vector<128x256xbf16>
    %cst_34 = arith.constant dense<0.000000e+00> : vector<16x256xf32>
    %109 = tpu.matmul %106, %108, %cst_34 {dimension_numbers = #tpu.dot_dimension_numbers<[1], [0], [0], [1], [0, 0, 1, 1], [], []>} : vector<16x128xbf16>, vector<128x256xbf16>, vector<16x256xf32> -> vector<16x256xf32>
    %c0_35 = arith.constant 0 : index
    %c0_36 = arith.constant 0 : index
    %c0_37 = arith.constant 0 : index
    %110 = vector.load %arg10[%c0_35, %c0_36, %c0_37] : memref<1x1x256xf32, #tpu.memory_space<vmem>>, vector<1x1x256xf32>
    %111 = vector.shape_cast %110 : vector<1x1x256xf32> to vector<1x256xf32>
    %112 = vector.broadcast %111 : vector<1x256xf32> to vector<16x256xf32>
    %113 = arith.addf %109, %112 : vector<16x256xf32>
    %cst_38 = arith.constant 0.000000e+00 : f32
    %114 = vector.broadcast %cst_38 : f32 to vector<16x256xf32>
    %115 = arith.maximumf %113, %114 : vector<16x256xf32>
    %116 = arith.truncf %115 : vector<16x256xf32> to vector<16x256xbf16>
    %c0_39 = arith.constant 0 : index
    %c0_40 = arith.constant 0 : index
    %c0_41 = arith.constant 0 : index
    %117 = vector.load %arg11[%c0_39, %c0_40, %c0_41] : memref<1x256x128xbf16, #tpu.memory_space<vmem>>, vector<1x256x128xbf16>
    %118 = vector.shape_cast %117 : vector<1x256x128xbf16> to vector<256x128xbf16>
    %cst_42 = arith.constant dense<0.000000e+00> : vector<16x128xf32>
    %119 = tpu.matmul %116, %118, %cst_42 {dimension_numbers = #tpu.dot_dimension_numbers<[1], [0], [0], [1], [0, 0, 1, 1], [], []>} : vector<16x256xbf16>, vector<256x128xbf16>, vector<16x128xf32> -> vector<16x128xf32>
    %c0_43 = arith.constant 0 : index
    %c0_44 = arith.constant 0 : index
    %c0_45 = arith.constant 0 : index
    %120 = vector.load %arg12[%c0_43, %c0_44, %c0_45] : memref<1x1x128xf32, #tpu.memory_space<vmem>>, vector<1x1x128xf32>
    %121 = vector.shape_cast %120 : vector<1x1x128xf32> to vector<1x128xf32>
    %122 = vector.broadcast %121 : vector<1x128xf32> to vector<16x128xf32>
    %123 = arith.addf %119, %122 : vector<16x128xf32>
    %124 = arith.addf %105, %123 : vector<16x128xf32>
    %c0_46 = arith.constant 0 : index
    %c0_47 = arith.constant 0 : index
    %c0_48 = arith.constant 0 : index
    %125 = vector.load %arg13[%c0_46, %c0_47, %c0_48] : memref<1x1x128xf32, #tpu.memory_space<vmem>>, vector<1x1x128xf32>
    %126 = vector.shape_cast %125 : vector<1x1x128xf32> to vector<1x128xf32>
    %c0_49 = arith.constant 0 : index
    %c0_50 = arith.constant 0 : index
    %c0_51 = arith.constant 0 : index
    %127 = vector.load %arg14[%c0_49, %c0_50, %c0_51] : memref<1x1x128xf32, #tpu.memory_space<vmem>>, vector<1x1x128xf32>
    %128 = vector.shape_cast %127 : vector<1x1x128xf32> to vector<1x128xf32>
    %cst_52 = arith.constant dense<0.000000e+00> : vector<16xf32>
    %129 = vector.multi_reduction <add>, %124, %cst_52 [1] : vector<16x128xf32> to vector<16xf32>
    %130 = vector.shape_cast %129 : vector<16xf32> to vector<16x1xf32>
    %cst_53 = arith.constant 1.280000e+02 : f32
    %131 = vector.broadcast %cst_53 : f32 to vector<16x1xf32>
    %132 = arith.divf %130, %131 : vector<16x1xf32>
    %133 = vector.broadcast %132 : vector<16x1xf32> to vector<16x128xf32>
    %134 = arith.subf %124, %133 : vector<16x128xf32>
    %135 = vector.broadcast %132 : vector<16x1xf32> to vector<16x128xf32>
    %136 = arith.subf %124, %135 : vector<16x128xf32>
    %137 = arith.mulf %134, %136 : vector<16x128xf32>
    %cst_54 = arith.constant dense<0.000000e+00> : vector<16xf32>
    %138 = vector.multi_reduction <add>, %137, %cst_54 [1] : vector<16x128xf32> to vector<16xf32>
    %139 = vector.shape_cast %138 : vector<16xf32> to vector<16x1xf32>
    %cst_55 = arith.constant 1.280000e+02 : f32
    %140 = vector.broadcast %cst_55 : f32 to vector<16x1xf32>
    %141 = arith.divf %139, %140 : vector<16x1xf32>
    %142 = vector.broadcast %132 : vector<16x1xf32> to vector<16x128xf32>
    %143 = arith.subf %124, %142 : vector<16x128xf32>
    %cst_56 = arith.constant 9.99999974E-6 : f32
    %144 = vector.broadcast %cst_56 : f32 to vector<16x1xf32>
    %145 = arith.addf %141, %144 : vector<16x1xf32>
    %146 = math.rsqrt %145 : vector<16x1xf32>
    %147 = vector.broadcast %146 : vector<16x1xf32> to vector<16x128xf32>
    %148 = arith.mulf %143, %147 : vector<16x128xf32>
    %149 = vector.broadcast %126 : vector<1x128xf32> to vector<16x128xf32>
    %150 = arith.mulf %148, %149 : vector<16x128xf32>
    %151 = vector.broadcast %128 : vector<1x128xf32> to vector<16x128xf32>
    %152 = arith.addf %150, %151 : vector<16x128xf32>
    %c0_57 = arith.constant 0 : index
    %c0_58 = arith.constant 0 : index
    %153 = vector.load %arg16[%c0_57, %c0_58] : memref<16x128xf32, #tpu.memory_space<vmem>>, vector<16x128xf32>
    tpu.vector_store %arg16[%c0_57, %c0_58], %152 {strides = array<i32>} : memref<16x128xf32, #tpu.memory_space<vmem>>, vector<16x128xf32>,
    %154 = vector.shape_cast %152 : vector<16x128xf32> to vector<2x8x128xf32>
    %c0_59 = arith.constant 0 : index
    %c0_60 = arith.constant 0 : index
    %c0_61 = arith.constant 0 : index
    %155 = vector.load %arg15[%c0_59, %c0_60, %c0_61] : memref<2x8x128xf32, #tpu.memory_space<vmem>>, vector<2x8x128xf32>
    tpu.vector_store %arg15[%c0_59, %c0_60, %c0_61], %154 {strides = array<i32>} : memref<2x8x128xf32, #tpu.memory_space<vmem>>, vector<2x8x128xf32>,
    return
  }
  func.func @transform_0(%arg0: i32) -> (i32, i32, i32) {
    %c0_i32 = arith.constant 0 : i32
    %c0_i32_0 = arith.constant 0 : i32
    %c0_i32_1 = arith.constant 0 : i32
    %c0_i32_2 = arith.constant 0 : i32
    return %c0_i32, %c0_i32_0, %c0_i32_1 : i32, i32, i32
  }
  func.func @transform_1(%arg0: i32) -> (i32, i32, i32) {
    %c0_i32 = arith.constant 0 : i32
    %c0_i32_0 = arith.constant 0 : i32
    %c0_i32_1 = arith.constant 0 : i32
    %c0_i32_2 = arith.constant 0 : i32
    return %c0_i32, %c0_i32_0, %c0_i32_1 : i32, i32, i32
  }
  func.func @transform_2(%arg0: i32) -> (i32, i32, i32) {
    %c0_i32 = arith.constant 0 : i32
    %c0_i32_0 = arith.constant 0 : i32
    %c0_i32_1 = arith.constant 0 : i32
    return %arg0, %c0_i32, %c0_i32_0 : i32, i32, i32
  }
  func.func @transform_3(%arg0: i32) -> (i32, i32, i32) {
    %c0_i32 = arith.constant 0 : i32
    %c0_i32_0 = arith.constant 0 : i32
    %c0_i32_1 = arith.constant 0 : i32
    return %arg0, %c0_i32, %c0_i32_0 : i32, i32, i32
  }
  func.func @transform_4(%arg0: i32) -> (i32, i32, i32) {
    %c0_i32 = arith.constant 0 : i32
    %c0_i32_0 = arith.constant 0 : i32
    %c0_i32_1 = arith.constant 0 : i32
    return %arg0, %c0_i32, %c0_i32_0 : i32, i32, i32
  }
  func.func @transform_5(%arg0: i32) -> (i32, i32, i32) {
    %c0_i32 = arith.constant 0 : i32
    %c0_i32_0 = arith.constant 0 : i32
    %c0_i32_1 = arith.constant 0 : i32
    return %arg0, %c0_i32, %c0_i32_0 : i32, i32, i32
  }
  func.func @transform_6(%arg0: i32) -> (i32, i32, i32) {
    %c0_i32 = arith.constant 0 : i32
    %c0_i32_0 = arith.constant 0 : i32
    %c0_i32_1 = arith.constant 0 : i32
    return %arg0, %c0_i32, %c0_i32_0 : i32, i32, i32
  }
  func.func @transform_7(%arg0: i32) -> (i32, i32, i32) {
    %c0_i32 = arith.constant 0 : i32
    %c0_i32_0 = arith.constant 0 : i32
    %c0_i32_1 = arith.constant 0 : i32
    return %arg0, %c0_i32, %c0_i32_0 : i32, i32, i32
  }
  func.func @transform_8(%arg0: i32) -> (i32, i32, i32) {
    %c0_i32 = arith.constant 0 : i32
    %c0_i32_0 = arith.constant 0 : i32
    %c0_i32_1 = arith.constant 0 : i32
    return %arg0, %c0_i32, %c0_i32_0 : i32, i32, i32
  }
  func.func @transform_9(%arg0: i32) -> (i32, i32, i32) {
    %c0_i32 = arith.constant 0 : i32
    %c0_i32_0 = arith.constant 0 : i32
    %c0_i32_1 = arith.constant 0 : i32
    return %arg0, %c0_i32, %c0_i32_0 : i32, i32, i32
  }
  func.func @transform_10(%arg0: i32) -> (i32, i32, i32) {
    %c0_i32 = arith.constant 0 : i32
    %c0_i32_0 = arith.constant 0 : i32
    %c0_i32_1 = arith.constant 0 : i32
    return %arg0, %c0_i32, %c0_i32_0 : i32, i32, i32
  }
  func.func @transform_11(%arg0: i32) -> (i32, i32, i32) {
    %c0_i32 = arith.constant 0 : i32
    %c0_i32_0 = arith.constant 0 : i32
    %c0_i32_1 = arith.constant 0 : i32
    return %arg0, %c0_i32, %c0_i32_0 : i32, i32, i32
  }
  func.func @transform_12(%arg0: i32) -> (i32, i32, i32) {
    %c0_i32 = arith.constant 0 : i32
    %c0_i32_0 = arith.constant 0 : i32
    %c0_i32_1 = arith.constant 0 : i32
    return %arg0, %c0_i32, %c0_i32_0 : i32, i32, i32
  }
  func.func @transform_13(%arg0: i32) -> (i32, i32, i32) {
    %c0_i32 = arith.constant 0 : i32
    %c0_i32_0 = arith.constant 0 : i32
    %c0_i32_1 = arith.constant 0 : i32
    return %arg0, %c0_i32, %c0_i32_0 : i32, i32, i32
  }
  func.func @transform_14(%arg0: i32) -> (i32, i32, i32) {
    %c0_i32 = arith.constant 0 : i32
    %c0_i32_0 = arith.constant 0 : i32
    %c0_i32_1 = arith.constant 0 : i32
    %c0_i32_2 = arith.constant 0 : i32
    return %c0_i32, %c0_i32_0, %c0_i32_1 : i32, i32, i32
  }
}

</mosaic_0001>

<bundles_post_ra>
// kernel: tpu_custom_call.1
= control target key start
LH: loop header
LB: loop body
LE: loop exit
PB: predicated region body
PF: predicated region fallthrough
CT: control target
= control target key end

     0   :  { %s4341_s0 = inlined_call_operand.hbm [shape: f32[2,8,128], index: 0, kind: input, shape index: {}]   ;;  %s4342_s1 = inlined_call_operand.hbm [shape: f32[2,8,128], index: 1, kind: input, shape index: {}]   ;;  %s4343_s2 = inlined_call_operand.hbm [shape: bf16[2,128,384], index: 2, kind: input, shape index: {}]   ;;  %s4344_s3 = inlined_call_operand.vmem [shape: f32[2,1,384], index: 3, kind: input, shape index: {}]   ;;  %s4345_s4 = inlined_call_operand.hbm [shape: bf16[2,128,128], index: 4, kind: input, shape index: {}]   ;;  %s4346_s5 = inlined_call_operand.vmem [shape: f32[2,1,128], index: 5, kind: input, shape index: {}]   ;;  %s4347_s6 = inlined_call_operand.vmem [shape: f32[2,1,128], index: 6, kind: input, shape index: {}]   ;;  %s4348_s7 = inlined_call_operand.vmem [shape: f32[2,1,128], index: 7, kind: input, shape index: {}]   ;;  %s4349_s8 = inlined_call_operand.hbm [shape: bf16[2,128,256], index: 8, kind: input, shape index: {}]   ;;  %s4350_s9 = inlined_call_operand.vmem [shape: f32[2,1,256], index: 9, kind: input, shape index: {}]   ;;  %s4351_s10 = inlined_call_operand.hbm [shape: bf16[2,256,128], index: 10, kind: input, shape index: {}]   ;;  %s4352_s11 = inlined_call_operand.vmem [shape: f32[2,1,128], index: 11, kind: input, shape index: {}]   ;;  %s4353_s12 = inlined_call_operand.vmem [shape: f32[2,1,128], index: 12, kind: input, shape index: {}]   ;;  %s4354_s13 = inlined_call_operand.vmem [shape: f32[2,1,128], index: 13, kind: input, shape index: {}]   ;;  %s4355_s14 = inlined_call_operand.hbm [shape: f32[2,8,128], index: 14, kind: output, shape index: {}]  }
   0x1   :  { %4377 = sst [smem:[#allocation20_spill]] %s4341_s0 }
   0x2   :  { %4378 = sst [smem:[#allocation21_spill]] %s4342_s1 }
   0x3   :  { %4379 = sst [smem:[#allocation22_spill]] %s4343_s2 }
   0x4   :  { %4380 = sst [smem:[#allocation23_spill]] %s4344_s3 }
   0x5   :  { %4381 = sst [smem:[#allocation24_spill]] %s4345_s4 }
   0x6   :  { %4382 = sst [smem:[#allocation25_spill]] %s4348_s7 }
   0x7   :  { %4383 = sst [smem:[#allocation26_spill]] %s4350_s9 }
   0x8   :  { %4384 = sst [smem:[#allocation27_spill]] %s4352_s11 }
   0x9   :  { %4385 = sst [smem:[#allocation28_spill]] %s4353_s12 }
   0xa   :  { %4386 = sst [smem:[#allocation29_spill]] %s4354_s13 }
   0xb   :  { %4387 = sst [smem:[#allocation30_spill]] %s4355_s14 }
   0xc   :  { %19 = vsyncpa [#allocation4], 0 }
   0xd   :  { %20 = vsyncpa [#allocation7], 0 }
   0xe   :  { %21 = vsyncpa [#allocation5], 0  ;;  %s3657_s29 = smov 0   ;;  %s3659_s30 = smov 0  }
   0xf   :  { %s3661_s15 = smov 0   ;;  %s3663_s16 = smov 0  }
  0x10 LB: > { %4388 = sst [smem:[#allocation17_spill]] %s3555_s15  ;;  %s3676_s17 = sadd.s32 4294967295, %s3559_s16   ;;  %s3559_s16 = sphi %s3663_s16, %s4434_s16   ;;  %s3555_s15 = sphi %s3661_s15, %s4436_s15   ;;  %s3551_s30 = sphi %s3659_s30, %s4438_s30   ;;  %s3547_s29 = sphi %s3657_s29, %s4437_s29  }
  0x11   : > { %s3679_s18 = sadd.s32 1, %s3559_s16   ;;  %s76_s20 = sadd.s32 1, %s3555_s15 }
  0x12   : > { %4389 = sst [smem:[#allocation18_spill]] %s3679_s18  ;;  %s73_s19 = ssub.s32 %s3559_s16, %s3679_s18 }
  0x13   : > { %p74_p0 = scmp.eq.s32.totalorder %s73_s19, 0  ;;  %p83_p1 = scmp.ne.s32.totalorder %s3555_s15, %s3551_s30 }
  0x14   : > { %p84_p2 = scmp.eq.s32.totalorder %s3559_s16, 0  ;;  %p89_p3 = scmp.ne.s32.totalorder %s3551_s30, %s3547_s29 }
  0x15   : > { %s3689_s21 = scalar_select %p74_p0, %s3555_s15, %s76_s20  }
  0x16   : > { %p3691_p4 = por %p84_p2, %p83_p1  ;;  %p4360_p5 = scmp.eq.s32.totalorder %s3676_s17, 0 }
  0x17   : > { %4390 = sst [smem:[#allocation19_spill]] %s3689_s21  ;;  %p2713_p6 = scmp.ge.s32.totalorder %s3559_s16, 1 }
  0x18   : > { %p407_p7 = scmp.lt.s32.totalorder %s3559_s16, 3  ;;  %p3700_p8 = por %p4360_p5, %p89_p3 }
  0x19   : > { %s3561_s25 = smov [#allocation3]   ;;  %p3082_p13 = scmp.lt.s32.totalorder %s3559_s16, 2 }
  0x1a   : > { %s4392_s23 = scalar_select %p3700_p8, 1, 0 }
  0x1b   : > { %p3705_p10 = pnand %p2713_p6, %p407_p7  ;;  %s419_s26 = sshll.u32 %s3561_s25, 4  ;;  %s420_s26 = int_to_ptr.vmem [resolvable:$true] %s419_s26 }
  0x1c   : > { %s3720_s29 = sand.u32 1, %s3555_s15   ;;  %p3724_p0 = pnand %p3082_p13, %p3691_p4 }
  0x1d   : > { %s4393_s24 = scalar_select %p3705_p10, 1, 0 }
  0x1e   : > { %p3060_p11 = pneg %p3705_p10  ;;  %s4396_s0 = sld [smem:[#allocation20_spill]] }
  0x1f   : > { %s4395_s19 = scalar_select %p3724_p0, 1, 0 }
  0x20   : > { %p3713_p12 = pnand %p3060_p11, %p4360_p5 }
  0x22   : > { %s4394_s27 = scalar_select %p3713_p12, 1, 0 }
  0x23   : > { %p4364_p2 = pneg %p3713_p12 }
  0x24   : > { %s3311_s21 = scalar_lea.hbm %s4396_s0, 256 }
  0x25   : > { %p3312_p1 = scmp.ne.s32.totalorder %s4396_s0, %s3311_s21  ;;  %p3318_p4 = scmp.lt.u32.totalorder %s3311_s21, %s4396_s0 }
  0x27   : > { %p3314_p3 = pnand %p4364_p2, %p3312_p1 }
  0x29   : > { %p3315_p6 = pneg %p3314_p3 }
  0x2b   : > { %p3320_p7 = pnand %p3318_p4, %p3315_p6 }
  0x2d   : > { %3323 = shalt.err (!%p3320_p7)
}
  0x2e   : > { %s3324_s15 = scalar_lea.vmem %s420_s26, 256  ;;  %p3332_p5 = scmp.lt.s32.totalorder %s420_s26, %s420_s26 }
  0x2f   : > { %p3325_p11 = scmp.ne.s32.totalorder %s420_s26, %s3324_s15  ;;  %p3333_p8 = scmp.lt.s32.totalorder %s3324_s15, %s3324_s15 }
  0x31   : > { %p3327_p13 = pnand %p3325_p11, %p4364_p2  ;;  %p3334_p10 = por %p3333_p8, %p3332_p5 }
  0x33   : > { %p3328_p9 = pneg %p3327_p13 }
  0x35   : > { %p3335_p0 = pnand %p3334_p10, %p3328_p9 }
  0x37   : > { %3338 = shalt.err (!%p3335_p0)
}
  0x38   : > { %s4367_s14 = smov 128   ;;  %s4369_s18 = smov 8  }
  0x39   : > { %3063 = dma.hbm_to_vmem [thread:$0]  (!%p3713_p12), %s4396_s0, 256, %s420_s26, [#allocation4], %s4367_s14, %s4367_s14, %s4369_s18  }
  0x3a   : > { %s3036_s15 = smul.u32 192, %s3720_s29  ;;  %s2718_s25 = sshll.u32 %s3720_s29, 6 }
  0x3b   : > { %s3037_s20 = smul.u32 3072, %s3559_s16  ;;  %s4397_s2 = sld [smem:[#allocation22_spill]] }
  0x3c   : > { %s450_s11 = scalar_lea.vmem [#allocation8], %s3036_s15  ;;  %s4398_s3 = sand.u32 1, %s3559_s16  }
  0x3d   : > { %s457_s9 = sshll.u32 %s450_s11, 4  ;;  %s3765_s7 = scalar_lea.sflag [#allocation4], %s4398_s3  ;;  %s3761_s9 = int_to_ptr.vmem [resolvable:$true] %s457_s9 }
  0x3e   : > { %p4399_p8 = scmp.ne.s32.totalorder %s4395_s19, 0 }
  0x40   : > { %p3771_p9 = pneg %p4399_p8 }
  0x41   : > { %s3759_s12 = scalar_lea.hbm %s4397_s2, %s3037_s20  ;;  %s3344_s11 = scalar_lea.hbm %s4397_s2, 6144 }
  0x42   : > { %s3339_s26 = scalar_lea.hbm %s3759_s12, 3072  ;;  %p3345_p1 = scmp.lt.u32.totalorder %s3759_s12, %s4397_s2 }
  0x43   : > { %p3340_p5 = scmp.ne.s32.totalorder %s3759_s12, %s3339_s26  ;;  %p3346_p3 = scmp.lt.u32.totalorder %s3344_s11, %s3339_s26 }
  0x44   : > { %s4400_s21 = scalar_select %p3771_p9, 1, 0 }
  0x45   : > { %p3342_p10 = pnand %p3771_p9, %p3340_p5  ;;  %p3347_p6 = por %p3346_p3, %p3345_p1 }
  0x46   : > { %p3348_p4 = scmp.lt.u32.totalorder %s3339_s26, %s3759_s12 }
  0x47   : > { %p3343_p0 = pneg %p3342_p10 }
  0x48   : > { %p3349_p7 = por %p3348_p4, %p3347_p6 }
  0x4a   : > { %p3350_p11 = pnand %p3349_p7, %p3343_p0 }
  0x4c   : > { %3353 = shalt.err (!%p3350_p11)
}
  0x4d   : > { %s3354_s3 = scalar_lea.vmem %s3761_s9, 3072  ;;  %s3564_s22 = smov [#allocation8]  }
  0x4e   : > { %p3355_p13 = scmp.ne.s32.totalorder %s3761_s9, %s3354_s3  ;;  %s3359_s13 = sshll.u32 %s3564_s22, 4  ;;  %s3360_s13 = int_to_ptr.vmem [resolvable:$false] %s3359_s13 }
  0x4f   : > { %s3361_s28 = scalar_lea.vmem %s3360_s13, 6144  ;;  %p3362_p2 = scmp.lt.s32.totalorder %s3761_s9, %s3360_s13 }
  0x50   : > { %p3357_p5 = pnand %p3355_p13, %p3771_p9  ;;  %p3363_p12 = scmp.lt.s32.totalorder %s3361_s28, %s3354_s3 }
  0x52   : > { %p3358_p10 = pneg %p3357_p5  ;;  %p3364_p1 = por %p3363_p12, %p3362_p2 }
  0x54   : > { %p3365_p3 = pnand %p3364_p1, %p3358_p10 }
  0x56   : > { %3368 = shalt.err (!%p3365_p3)
}
  0x57   : > { %s3565_s26 = smov 192   ;;  %s3566_s11 = smov 12  }
  0x58   : > { %3070 = dma.hbm_to_vmem [thread:$0]  (!%p4399_p8), %s3759_s12, 3072, %s3761_s9, %s3765_s7, %s3565_s26, %s3565_s26, %s3566_s11  }
  0x59   : > { %s2825_s15 = sshll.u32 %s3559_s16, 10  ;;  %s478_s20 = scalar_lea.vmem [#allocation9], %s2718_s25 }
  0x5a   : > { %s485_s22 = sshll.u32 %s478_s20, 4  ;;  %s4401_s4 = sld [smem:[#allocation24_spill]]  ;;  %s3803_s22 = int_to_ptr.vmem [resolvable:$true] %s485_s22 }
  0x60   : > { %s3801_s28 = scalar_lea.hbm %s4401_s4, %s2825_s15  ;;  %s3374_s25 = scalar_lea.hbm %s4401_s4, 2048 }
  0x61   : > { %s3369_s14 = scalar_lea.hbm %s3801_s28, 1024  ;;  %p3375_p6 = scmp.lt.u32.totalorder %s3801_s28, %s4401_s4 }
  0x62   : > { %p3370_p12 = scmp.ne.s32.totalorder %s3801_s28, %s3369_s14  ;;  %p3376_p4 = scmp.lt.u32.totalorder %s3374_s25, %s3369_s14 }
  0x63   : > { %p3378_p11 = scmp.lt.u32.totalorder %s3369_s14, %s3801_s28 }
  0x64   : > { %p3372_p2 = pnand %p3370_p12, %p3771_p9  ;;  %p3377_p7 = por %p3376_p4, %p3375_p6 }
  0x66   : > { %p3373_p0 = pneg %p3372_p2  ;;  %p3379_p13 = por %p3378_p11, %p3377_p7 }
  0x68   : > { %p3380_p5 = pnand %p3379_p13, %p3373_p0 }
  0x6a   : > { %3383 = shalt.err (!%p3380_p5)
}
  0x6b   : > { %s3384_s15 = scalar_lea.vmem %s3803_s22, 1024  ;;  %s3567_s20 = smov [#allocation9]  }
  0x6c   : > { %p3385_p10 = scmp.ne.s32.totalorder %s3803_s22, %s3384_s15  ;;  %s3389_s13 = sshll.u32 %s3567_s20, 4  ;;  %s3390_s13 = int_to_ptr.vmem [resolvable:$false] %s3389_s13 }
  0x6d   : > { %s3391_s3 = scalar_lea.vmem %s3390_s13, 2048  ;;  %p3392_p12 = scmp.lt.s32.totalorder %s3803_s22, %s3390_s13 }
  0x6e   : > { %p3387_p1 = pnand %p3385_p10, %p3771_p9  ;;  %p3393_p2 = scmp.lt.s32.totalorder %s3391_s3, %s3384_s15 }
  0x70   : > { %p3388_p3 = pneg %p3387_p1  ;;  %p3394_p6 = por %p3393_p2, %p3392_p12 }
  0x72   : > { %p3395_p4 = pnand %p3394_p6, %p3388_p3 }
  0x74   : > { %3398 = shalt.err (!%p3395_p4)
}
  0x75   : > { %s4371_s14 = smov 64   ;;  %s4372_s9 = smov 4  }
  0x76   : > { %3073 = dma.hbm_to_vmem [thread:$0]  (!%p4399_p8), %s3801_s28, 1024, %s3803_s22, %s3765_s7, %s4371_s14, %s4371_s14, %s4372_s9  }
  0x77   : > { %s4373_s12 = sshll.u32 %s3720_s29, 7  ;;  %s2826_s25 = sshll.u32 %s3559_s16, 11 }
  0x78   : > { %s3837_s15 = scalar_lea.hbm %s4349_s8, %s2826_s25  ;;  %s517_s20 = scalar_lea.vmem [#allocation10], %s4373_s12 }
  0x79   : > { %s524_s13 = sshll.u32 %s517_s20, 4  ;;  %s3570_s3 = smov [#allocation6]   ;;  %s3841_s13 = int_to_ptr.vmem [resolvable:$true] %s524_s13 }
  0x7a   : > { %s3843_s18 = sshll.u32 %s3570_s3, 4  ;;  %s3399_s22 = scalar_lea.hbm %s3837_s15, 2048  ;;  %s433_s18 = int_to_ptr.vmem [resolvable:$true] %s3843_s18 }
  0x7b   : > { %p3400_p0 = scmp.ne.s32.totalorder %s3837_s15, %s3399_s22  ;;  %s3404_s11 = scalar_lea.hbm %s4349_s8, 4096 }
  0x7c   : > { %p3405_p13 = scmp.lt.u32.totalorder %s3837_s15, %s4349_s8  ;;  %p3406_p5 = scmp.lt.u32.totalorder %s3404_s11, %s3399_s22 }
  0x7d   : > { %p3402_p7 = pnand %p3400_p0, %p3771_p9  ;;  %p3408_p1 = scmp.lt.u32.totalorder %s3399_s22, %s3837_s15 }
  0x7e   : > { %p3407_p10 = por %p3406_p5, %p3405_p13 }
  0x7f   : > { %p3403_p11 = pneg %p3402_p7 }
  0x80   : > { %p3409_p3 = por %p3408_p1, %p3407_p10 }
  0x82   : > { %p3410_p12 = pnand %p3409_p3, %p3403_p11 }
  0x84   : > { %3413 = shalt.err (!%p3410_p12)
}
  0x85   : > { %s3414_s20 = scalar_lea.vmem %s3841_s13, 2048  ;;  %s3571_s3 = smov [#allocation10]  }
  0x86   : > { %p3415_p2 = scmp.ne.s32.totalorder %s3841_s13, %s3414_s20  ;;  %s3419_s28 = sshll.u32 %s3571_s3, 4  ;;  %s3420_s28 = int_to_ptr.vmem [resolvable:$false] %s3419_s28 }
  0x87   : > { %s3421_s14 = scalar_lea.vmem %s3420_s28, 4096  ;;  %p3422_p0 = scmp.lt.s32.totalorder %s3841_s13, %s3420_s28 }
  0x88   : > { %p3417_p6 = pnand %p3415_p2, %p3771_p9  ;;  %p3423_p7 = scmp.lt.s32.totalorder %s3421_s14, %s3414_s20 }
  0x8a   : > { %p3418_p4 = pneg %p3417_p6  ;;  %p3424_p13 = por %p3423_p7, %p3422_p0 }
  0x8c   : > { %p3425_p5 = pnand %p3424_p13, %p3418_p4 }
  0x8e   : > { %3428 = shalt.err (!%p3425_p5)
}
  0x8f   : > { %s4402_s9 = smov 8   ;;  %s4403_s22 = smov 128  }
  0x90   : > { %3076 = dma.hbm_to_vmem [thread:$0]  (!%p4399_p8), %s3837_s15, 2048, %s3841_s13, %s3765_s7, %s4403_s22, %s4403_s22, %s4402_s9  }
  0x91   : > { %s4404_s1 = sld [smem:[#allocation21_spill]]  ;;  %p4405_p10 = scmp.ne.s32.totalorder %s4394_s27, 0 }
  0x93   : > { %p4406_p1 = pneg %p4405_p10 }
  0x97   : > { %s3429_s3 = scalar_lea.hbm %s4404_s1, 256 }
  0x98   : > { %p3430_p11 = scmp.ne.s32.totalorder %s4404_s1, %s3429_s3  ;;  %p3436_p2 = scmp.lt.u32.totalorder %s3429_s3, %s4404_s1 }
  0x9a   : > { %p3432_p3 = pnand %p3430_p11, %p4406_p1 }
  0x9c   : > { %p3433_p12 = pneg %p3432_p3 }
  0x9e   : > { %p3438_p6 = pnand %p3436_p2, %p3433_p12 }
  0xa0   : > { %3441 = shalt.err (!%p3438_p6)
}
  0xa1   : > { %s3442_s15 = scalar_lea.vmem %s433_s18, 256  ;;  %p4407_p0 = pmov %p4406_p1 }
  0xa2   : > { %p3443_p4 = scmp.ne.s32.totalorder %s433_s18, %s3442_s15  ;;  %p3450_p5 = scmp.lt.s32.totalorder %s433_s18, %s433_s18 }
  0xa3   : > { %p3451_p8 = scmp.lt.s32.totalorder %s3442_s15, %s3442_s15 }
  0xa4   : > { %p3445_p7 = pnand %p3443_p4, %p4407_p0 }
  0xa5   : > { %p3452_p9 = por %p3451_p8, %p3450_p5 }
  0xa6   : > { %p3446_p13 = pneg %p3445_p7 }
  0xa8   : > { %p3453_p1 = pnand %p3452_p9, %p3446_p13 }
  0xaa   : > { %3456 = shalt.err (!%p3453_p1)
}
  0xab   : > { %3066 = dma.hbm_to_vmem [thread:$0]  (!%p4405_p10), %s4404_s1, 256, %s433_s18, [#allocation7], %s4403_s22, %s4403_s22, %s4402_s9  }
  0xac   : > { %s3899_s3 = scalar_lea.hbm %s4351_s10, %s2826_s25  ;;  %s4408_s20 = sshll.u32 %s3720_s29, 7 }
  0xad   : > { %s545_s27 = scalar_lea.vmem [#allocation11], %s4408_s20  ;;  %s3457_s14 = scalar_lea.hbm %s3899_s3, 2048 }
  0xae   : > { %s552_s28 = sshll.u32 %s545_s27, 4  ;;  %p3458_p8 = scmp.ne.s32.totalorder %s3899_s3, %s3457_s14  ;;  %s3903_s28 = int_to_ptr.vmem [resolvable:$true] %s552_s28 }
  0xaf   : > { %p4409_p9 = scmp.ne.s32.totalorder %s4400_s21, 0  ;;  %s3462_s9 = scalar_lea.hbm %s4351_s10, 4096 }
  0xb0   : > { %p3463_p3 = scmp.lt.u32.totalorder %s3899_s3, %s4351_s10  ;;  %p3464_p12 = scmp.lt.u32.totalorder %s3462_s9, %s3457_s14 }
  0xb1   : > { %p3460_p11 = pnand %p3458_p8, %p4409_p9  ;;  %p3466_p6 = scmp.lt.u32.totalorder %s3457_s14, %s3899_s3 }
  0xb2   : > { %p3465_p2 = por %p3464_p12, %p3463_p3 }
  0xb3   : > { %p3461_p10 = pneg %p3460_p11 }
  0xb4   : > { %p3467_p4 = por %p3466_p6, %p3465_p2 }
  0xb6   : > { %p3468_p0 = pnand %p3467_p4, %p3461_p10 }
  0xb8   : > { %3471 = shalt.err (!%p3468_p0)
}
  0xb9   : > { %s3472_s29 = scalar_lea.vmem %s3903_s28, 2048  ;;  %s3572_s15 = smov [#allocation11]  }
  0xba   : > { %p3473_p7 = scmp.ne.s32.totalorder %s3903_s28, %s3472_s29  ;;  %s3477_s12 = sshll.u32 %s3572_s15, 4  ;;  %s3478_s12 = int_to_ptr.vmem [resolvable:$false] %s3477_s12 }
  0xbb   : > { %s3479_s13 = scalar_lea.vmem %s3478_s12, 4096  ;;  %p3480_p1 = scmp.lt.s32.totalorder %s3903_s28, %s3478_s12 }
  0xbc   : > { %p3475_p13 = pnand %p3473_p7, %p4409_p9  ;;  %p3481_p8 = scmp.lt.s32.totalorder %s3479_s13, %s3472_s29 }
  0xbe   : > { %p3476_p5 = pneg %p3475_p13  ;;  %p3482_p11 = por %p3481_p8, %p3480_p1 }
  0xc0   : > { %p3483_p3 = pnand %p3482_p11, %p3476_p5 }
  0xc2   : > { %3486 = shalt.err (!%p3483_p3)
}
  0xc3   : > { %p4410_p10 = scmp.ne.s32.totalorder %s4395_s19, 0  ;;  %s4411_s26 = smov 4  }
  0xc4   : > { %s4412_s11 = smov 64   ;;  %p4413_p9 = scmp.ne.s32.totalorder %s4393_s24, 0 }
  0xc5   : > { %3079 = dma.hbm_to_vmem [thread:$0]  (!%p4410_p10), %s3899_s3, 2048, %s3903_s28, %s3765_s7, %s4412_s11, %s4412_s11, %s4411_s26  }
  0xc6   : > { %582 = sbr.rel (%p4413_p9) target bundleno = 2843 (0xb1b), region = 76  ;;  %p4414_p12 = scmp.eq.s32.totalorder (!%p4413_p9), %s3676_s17, 0 }
  0xcd   : > { %3530 = dma.done.wait (%p4414_p12), [#allocation4], 256   ;;  %p4415_p2 = pmov %p4414_p12 }
  0xcf   : > { %3532 = vsyncadd (%p4415_p2), [#allocation4], 4294967040  ;;  %p4416_p6 = pmov %p4415_p2 }
  0xd0   : > { %p4417_p4 = pmov %p4415_p2 }
  0xd1   : > { %3534 = dma.done.wait (%p4416_p6), [#allocation7], 256  }
  0xd2   : > { %3536 = vsyncadd (%p4417_p4), [#allocation7], 4294967040  ;;  %s592_s19 = sand.u32 1, %s3676_s17   ;;  %s594_s7 = sand.u32 1, %s3551_s30  }
  0xd3   : > { %s3038_s21 = smul.u32 192, %s594_s7  ;;  %s593_s24 = scalar_lea.sflag [#allocation4], %s592_s19 }
  0xd4   : > { %p4418_p0 = scmp.ne.s32.totalorder %s4392_s23, 0 }
  0xd5   : > { %s3942_s3 = scalar_lea.vmem [#allocation8], %s3038_s21 }
  0xd6   : > { %3538 = dma.done.wait (%p4418_p0), %s593_s24, 8192  }
  0xd7   : > { %3540 = vsyncadd (%p4418_p0), %s593_s24, 4294959104  ;;  %s2730_s20 = sshll.u32 %s594_s7, 6  ;;  %s2731_s27 = sshll.u32 %s594_s7, 7 }
  0xd8   : > { %p704_p7 = scmp.lt.s32.totalorder %s3676_s17, 1  ;;  %s4420_s19 = sld [smem:[#allocation23_spill]] }
  0xd9   : > { %s4421_s1 = sld [smem:[#allocation26_spill]]  ;;  %s4422_s23 = sld [smem:[#allocation27_spill]] }
  0xda   : > { %s3950_s28 = scalar_select %p704_p7, %s3676_s17, 1 }
  0xdb   : > { %s4423_s4 = sld [smem:[#allocation28_spill]]  ;;  %s4424_s13 = sld [smem:[#allocation29_spill]] }
  0xdc   : > { %s3039_s14 = smul.u32 3, %s3950_s28  ;;  %s2733_s21 = sshll.u32 %s3950_s28, 1 }
  0xdd   : > { %s3990_s11 = scalar_lea.vmem [#allocation10], %s2731_s27  ;;  %p4425_p13 = scmp.ne.s32.totalorder %s3676_s17, 0 }
  0xde   : > { %s3968_s7 = scalar_lea.vmem %s4420_s19, %s3039_s14  ;;  %s3988_s14 = scalar_lea.vmem [#allocation9], %s2730_s20  ;;  %v735_v0 = vld [vmem:[#allocation3] sm:$0xff] (!%p4425_p13)  ;;  %v737_v1 = vld [vmem:[#allocation6] sm:$0xff] (!%p4425_p13)  ;;  %v736_v2 = vld [vmem:[#allocation3 + $0x8] sm:$0xff] (!%p4425_p13) }
  0xdf   : > { %s3974_s2 = scalar_lea.vmem %s4421_s1, %s2733_s21  ;;  %s723_s9 = scalar_lea.vmem %s4422_s23, %s3950_s28  ;;  %v739_v3 = vadd.f32 (!%p4425_p13), %v737_v1, %v735_v0  ;;  %v738_v4 = vld [vmem:[#allocation6 + $0x8] sm:$0xff] (!%p4425_p13) }
  0xe0   : > { %s3992_s19 = scalar_lea.vmem [#allocation11], %s2731_s27  ;;  %734 = sbr.rel (%p4425_p13) target bundleno = 231 (0xe7), region = 104  ;;  %v740_v5 = vadd.f32 (!%p4425_p13), %v738_v4, %v736_v2 }
  0xe1   : > { %s726_s29 = scalar_lea.vmem %s4423_s4, %s3950_s28  ;;  %s729_s26 = scalar_lea.vmem %s4424_s13, %s3950_s28  ;;  %741 = vst [vmem:[#allocation2] sm:$0xff] (!%p4425_p13), %v739_v3 }
  0xe2   : > { %742 = vst [vmem:[#allocation2 + $0x8] sm:$0xff] (!%p4425_p13), %v740_v5 }
  0xe7 PF: > { %v3191_v6 = vld [vmem:[%s3942_s3 + $0x4] ss:$12 sps:$4 sm:$0xff]   ;;  %v3193_v7 = vld [vmem:[%s3942_s3] ss:$12 sps:$4 sm:$0xff]   ;;  %v3573_v8 = vmov 0   ;;  %v3574_v9 = vmov 0.0   ;;  %v780_v35 = vlaneseq  ;;  %s4426_s27 = scalar_lea.vmem %s4346_s5, %s3950_s28  ;;  %s4427_s13 = scalar_lea.vmem %s4347_s6, %s3950_s28 }
  0xe8   : > { %955 = vmatprep.mubr.bf16.mxu0 %v3573_v8  ;;  %2900 = vmatprep.subr.bf16.mxu1 %v3574_v9  ;;  %v3194_v10 = vld [vmem:[%s3942_s3 + $0x1c] ss:$12 sps:$4 sm:$0xff]   ;;  %v3196_v11 = vld [vmem:[%s3942_s3 + $0x18] ss:$12 sps:$4 sm:$0xff]   ;;  %v3197_v12 = vld [vmem:[%s3942_s3 + $0x34] ss:$12 sps:$4 sm:$0xff]  }
  0xe9   : > { %923 = vmatprep.subr.bf16.mxu0 %v3191_v6  ;;  %v3199_v13 = vld [vmem:[%s3942_s3 + $0x30] ss:$12 sps:$4 sm:$0xff]   ;;  %v3200_v14 = vld [vmem:[%s3942_s3 + $0x4c] ss:$12 sps:$4 sm:$0xff]   ;;  %v3202_v15 = vld [vmem:[%s3942_s3 + $0x48] ss:$12 sps:$4 sm:$0xff]  }
  0xea   : > { %924 = vmatpush1.bf16.msra.mxu0 %v3193_v7  ;;  %v3203_v16 = vld [vmem:[%s3942_s3 + $0x64] ss:$12 sps:$4 sm:$0xff]   ;;  %v3215_v17 = vld [vmem:[%s3942_s3 + $0x8] ss:$12 sps:$4 sm:$0xff]   ;;  %v3216_v18 = vld [vmem:[%s3942_s3 + $0x20] ss:$12 sps:$4 sm:$0xff]  }
  0xeb   : > { %925 = vmatprep.subr.bf16.mxu0 %v3194_v10  ;;  %2901 = vmatpush3.bf16.msra.mxu1 %v3215_v17  ;;  %v3205_v19 = vld [vmem:[%s3942_s3 + $0x60] ss:$12 sps:$4 sm:$0xff]   ;;  %v3206_v20 = vld [vmem:[%s3942_s3 + $0x7c] ss:$12 sps:$4 sm:$0xff]   ;;  %v3217_v21 = vld [vmem:[%s3942_s3 + $0x38] ss:$12 sps:$4 sm:$0xff]  }
  0xec   : > { %2902 = vmatprep.subr.bf16.mxu1 %v3574_v9  ;;  %v3208_v22 = vld [vmem:[%s3942_s3 + $0x78] ss:$12 sps:$4 sm:$0xff]   ;;  %v3209_v23 = vld [vmem:[%s3942_s3 + $0x94] ss:$12 sps:$4 sm:$0xff]   ;;  %v3218_v24 = vld [vmem:[%s3942_s3 + $0x50] ss:$12 sps:$4 sm:$0xff]  }
  0xed   : > { %v3211_v25 = vld [vmem:[%s3942_s3 + $0x90] ss:$12 sps:$4 sm:$0xff]   ;;  %v3212_v26 = vld [vmem:[%s3942_s3 + $0xac] ss:$12 sps:$4 sm:$0xff]   ;;  %v3219_v27 = vld [vmem:[%s3942_s3 + $0x68] ss:$12 sps:$4 sm:$0xff]  }
  0xee   : > { %926 = vmatpush1.bf16.msra.mxu0 %v3196_v11  ;;  %v3214_v28 = vld [vmem:[%s3942_s3 + $0xa8] ss:$12 sps:$4 sm:$0xff]   ;;  %v4024_v30 = vld [vmem:[#allocation2 + $0x8] sm:$0xff]  ;;  %v3220_v31 = vld [vmem:[%s3942_s3 + $0x80] ss:$12 sps:$4 sm:$0xff]   ;;  %vm3575_vm0 = vmmov 0  }
  0xef   : > { %927 = vmatprep.subr.bf16.mxu0 %v3197_v12  ;;  %2903 = vmatpush3.bf16.msra.mxu1 %v3216_v18  ;;  %v4022_v29 = vld [vmem:[#allocation2] sm:$0xff]  ;;  %v3221_v33 = vld [vmem:[%s3942_s3 + $0x98] ss:$12 sps:$4 sm:$0xff]   ;;  %v4043_v36 = vshrl.u32 %v780_v35, 7  ;;  %vm1093_vm1 = vcmask 261120   ;;  %s3576_s0 = smov 96  }
  0xf0   : > { %2904 = vmatprep.subr.bf16.mxu1 %v3574_v9  ;;  %v745_v32 = vpack.c.bf16 %v4024_v30, %v4022_v29  ;;  %v3222_v34 = vld [vmem:[%s3942_s3 + $0xb0] ss:$12 sps:$4 sm:$0xff]   ;;  %2916 = vmatprep.mubr.msk.bf16.mxu1 %vm3575_vm0, %v3574_v9  ;;  %s3577_s1 = smov 64   ;;  %s3578_s4 = smov 32   ;;  %vm1562_vm2 = vcmask 1043456   ;;  %vm1462_vm3 = vcmask 64512  }
  0xf1   : > { %v782_v37 = vsub.s32 0, %v4043_v36  ;;  %v4047_v38 = vld [vmem:[%s3968_s7] sm:$0x7]  ;;  %v786_v39 = vsub.s32 1, %v4043_v36  ;;  %vm1954_vm4 = vcmask 523264   ;;  %vm1957_vm5 = vcmask 785408  }
  0xf2   : > { %928 = vmatpush1.bf16.msra.mxu0 %v3199_v13  ;;  %s4428_s24 = sld [smem:[#allocation25_spill]]  ;;  %p3085_p5 = scmp.eq.s32.totalorder %s3676_s17, 1 }
  0xf3   : > { %929 = vmatprep.subr.bf16.mxu0 %v3200_v14  ;;  %2905 = vmatpush3.bf16.msra.mxu1 %v3217_v21  ;;  %v783_v40 = vrot.slane %v4047_v38, %v782_v37  ;;  %v787_v41 = vrot.slane %v4047_v38, %v786_v39 }
  0xf4   : > { %2906 = vmatprep.subr.bf16.mxu1 %v3574_v9 }
  0xf6   : > { %930 = vmatpush1.bf16.msra.mxu0 %v3202_v15 }
  0xf7   : > { %931 = vmatprep.subr.bf16.mxu0 %v3203_v16  ;;  %2907 = vmatpush3.bf16.msra.mxu1 %v3218_v24 }
  0xf8   : > { %2908 = vmatprep.subr.bf16.mxu1 %v3574_v9  ;;  %s4429_s16 = scalar_lea.vmem %s4428_s24, %s3950_s28 }
  0xfa   : > { %932 = vmatpush1.bf16.msra.mxu0 %v3205_v19  ;;  %v790_v19 = vsub.s32 2, %v4043_v36  ;;  %v2802_v36 = vld [vmem:[%s723_s9] ss:$0 sm:$0xff] }
  0xfb   : > { %933 = vmatprep.subr.bf16.mxu0 %v3206_v20  ;;  %2909 = vmatpush3.bf16.msra.mxu1 %v3219_v27 }
  0xfc   : > { %2910 = vmatprep.subr.bf16.mxu1 %v3574_v9  ;;  %v791_v24 = vrot.slane %v4047_v38, %v790_v19 }
  0xfe   : > { %934 = vmatpush1.bf16.msra.mxu0 %v3208_v22 }
  0xff   : > { %935 = vmatprep.subr.bf16.mxu0 %v3209_v23  ;;  %2911 = vmatpush3.bf16.msra.mxu1 %v3220_v31 }
 0x100   : > { %2912 = vmatprep.subr.bf16.mxu1 %v3574_v9 }
 0x102   : > { %936 = vmatpush1.bf16.msra.mxu0 %v3211_v25 }
 0x103   : > { %937 = vmatprep.subr.bf16.mxu0 %v3212_v26  ;;  %2913 = vmatpush3.bf16.msra.mxu1 %v3221_v33 }
 0x104   : > { %2914 = vmatprep.subr.bf16.mxu1 %v3574_v9 }
 0x106   : > { %938 = vmatpush1.bf16.msra.mxu0 %v3214_v28 }
 0x107   : > { %2944 = vmatprep.subr.bf16.mxu0 %v3574_v9  ;;  %2915 = vmatpush3.bf16.msra.mxu1 %v3222_v34 }
 0x108   : > { %2920 = vmatprep.subr.bf16.mxu1 %v3574_v9 }
 0x109   : > { %956 = vmatmul.mubr.bf16.vlgmr.msra.gmra.mrb[0].mxu0 %v745_v32 }
 0x10a   : > { %2946 = vmatprep.mubr.msk.bf16.mxu0 %vm3575_vm0, %v3574_v9  ;;  %2917 = vmatmul.mubr.bf16.vlgmr.msra.gmra.mrb[0].mxu1 %v745_v32 }
 0x10b   : > { %2922 = vmatprep.mubr.msk.bf16.mxu1 %vm3575_vm0, %v3574_v9 }
 0x1dc   : > { %v957_v42 = vpop.f32.mrb[0].mxu0 }
 0x1dd   : > { %v958_v43 = vadd.f32 %v957_v42, %v783_v40  ;;  %v959_v44 = vpop.f32.mrb[1].mxu0  ;;  %v1000_v61 = vpop.f32.mrb[0].mxu1 }
 0x1de   : > { %v960_v45 = vadd.f32 %v959_v44, %v787_v41  ;;  %v961_v46 = vpop.f32.mrb[2].mxu0  ;;  %v2918_v62 = vpop.f32.mrb[1].mxu1  ;;  %v4086_v33 = vadd.f32 %v1000_v61, %v791_v24 }
 0x1df   : > { %v1007_v47 = vmul.f32 0.17677669, %v958_v43  ;;  %v962_v48 = vadd.f32 %v961_v46, %v783_v40  ;;  %v963_v49 = vpop.f32.mrb[3].mxu0  ;;  %v1003_v63 = vpop.f32.mrb[2].mxu1 }
 0x1e0   : > { %v964_v50 = vadd.f32 %v963_v49, %v787_v41  ;;  %1039 = vrot.lane.b32.xlu0 %v960_v45, %s3576_s0  ;;  %v1057_v51 = vpack.c.bf16 %v960_v45, %v960_v45  ;;  %v2919_v0 = vpop.f32.mrb[3].mxu1  ;;  %v1085_v41 = vpack.c.bf16 %v4086_v33, %v4086_v33  ;;  %v4098_v43 = vadd.f32 %v1003_v63, %v791_v24 }
 0x1e1   : > { %v1008_v52 = vmul.f32 0.17677669, %v962_v48  ;;  %v1029_v58 = vpack.c.bf16 %v1007_v47, %v1007_v47 }
 0x1e2   : > { %v1098_v53 = vsel %vm1093_vm1, %v1057_v51, 0  ;;  %v3136_v54 = vpack.i.bf16 %v964_v50, %v1007_v47  ;;  %v3141_v55 = vpack.i.bf16 %v964_v50, %v960_v45  ;;  %v1058_v57 = vpack.c.bf16 %v964_v50, %v964_v50 }
 0x1e3   : > { %1013 = vrot.lane.b32.xlu1 %v1008_v52, %s3576_s0  ;;  %2921 = vmatpush3.bf16.xpose.msra.mxu1 %v1098_v53  ;;  %v3146_v56 = vpack.i.bf16 %v1008_v52, %v1007_v47  ;;  %v1030_v60 = vpack.c.bf16 %v1008_v52, %v1008_v52  ;;  %v1564_v46 = vsel %vm1562_vm2, %v1085_v41, 0  ;;  %v1086_v48 = vpack.c.bf16 %v4098_v43, %v4098_v43 }
 0x1e4   : > { %3137 = vrot.lane.b32.xlu0 %v3136_v54, %s3576_s0  ;;  %2926 = vmatprep.subr.bf16.mxu1 %v3574_v9  ;;  %v1144_v59 = vsel %vm1093_vm1, %v1058_v57, 0 }
 0x1e5   : > { %v1610_v50 = vsel %vm1562_vm2, %v1086_v48, 0 }
 0x1e7   : > { %3142 = vrot.lane.b32.xlu1 %v3141_v55, %s3577_s1 }
 0x1e8   : > { %3147 = vrot.lane.b32.xlu0 %v3146_v56, %s3577_s1 }
 0x1ea   : > { %2923 = vmatmul.mubr.msk.bf16.vlgmr.msra.gmra.mrb[4].mxu1 %vm1093_vm1, %v1029_v58 }
 0x1eb   : > { %3152 = vrot.lane.b32.xlu1 %v3141_v55, %s3578_s4  ;;  %2927 = vmatpush3.bf16.xpose.msra.mxu1 %v1144_v59 }
 0x1ec   : > { %3157 = vrot.lane.b32.xlu0 %v3146_v56, %s3578_s4  ;;  %2928 = vmatprep.mubr.msk.bf16.mxu1 %vm3575_vm0, %v3574_v9 }
 0x1ed   : > { %2932 = vmatprep.subr.bf16.mxu1 %v3574_v9 }
 0x1f2   : > { %2929 = vmatmul.mubr.msk.bf16.vlgmr.msra.gmra.mrb[8].mxu1 %vm1093_vm1, %v1030_v60 }
 0x1f3   : > { %2934 = vmatprep.mubr.msk.bf16.mxu1 %vm3575_vm0, %v3574_v9 }
 0x252   : > { %v1040_v1 = vpop.permute.xlu0 %1039 }
 0x253   : > { %v1059_v2 = vpack.c.bf16 %v1040_v1, %v1040_v1 }
 0x255   : > { %v1190_v3 = vsel %vm1093_vm1, %v1059_v2, 0  ;;  %v1014_v4 = vpop.permute.xlu1 %1013 }
 0x256   : > { %v3138_v5 = vpop.permute.xlu0 %3137  ;;  %2933 = vmatpush3.bf16.xpose.msra.mxu1 %v1190_v3  ;;  %v1032_v26 = vpack.c.bf16 %v1014_v4, %v1014_v4 }
 0x257   : > { %v3140_v6 = vunpack.i.h.bf16 %v3138_v5  ;;  %v3139_v7 = vunpack.i.l.bf16 %v3138_v5  ;;  %2938 = vmatprep.subr.bf16.mxu1 %v3574_v9 }
 0x259   : > { %v1060_v10 = vpack.c.bf16 %v3140_v6, %v3140_v6  ;;  %v3143_v11 = vpop.permute.xlu1 %3142  ;;  %v1031_v13 = vpack.c.bf16 %v3139_v7, %v3139_v7 }
 0x25a   : > { %v3144_v12 = vunpack.i.l.bf16 %v3143_v11  ;;  %v3145_v15 = vunpack.i.h.bf16 %v3143_v11  ;;  %v3148_v16 = vpop.permute.xlu0 %3147 }
 0x25b   : > { %v1236_v18 = vsel %vm1093_vm1, %v1060_v10, 0  ;;  %v3149_v22 = vunpack.i.l.bf16 %v3148_v16  ;;  %v3150_v35 = vunpack.i.h.bf16 %v3148_v16 }
 0x25c   : > { %v1061_v14 = vpack.c.bf16 %v3144_v12, %v3144_v12  ;;  %v1062_v23 = vpack.c.bf16 %v3145_v15, %v3145_v15 }
 0x25d   : > { %v3153_v17 = vpop.permute.xlu1 %3152  ;;  %2935 = vmatmul.mubr.msk.bf16.vlgmr.msra.gmra.mrb[12].mxu1 %vm1093_vm1, %v1031_v13  ;;  %v1033_v27 = vpack.c.bf16 %v3149_v22, %v3149_v22  ;;  %v1034_v42 = vpack.c.bf16 %v3150_v35, %v3150_v35 }
 0x25e   : > { %v3154_v20 = vunpack.i.l.bf16 %v3153_v17  ;;  %2939 = vmatpush3.bf16.xpose.msra.mxu1 %v1236_v18  ;;  %v1282_v21 = vsel %vm1093_vm1, %v1061_v14, 0  ;;  %2940 = vmatprep.mubr.msk.bf16.mxu1 %vm3575_vm0, %v3574_v9  ;;  %v3155_v28 = vunpack.i.h.bf16 %v3153_v17  ;;  %v3158_v31 = vpop.permute.xlu0 %3157  ;;  %v1328_v32 = vsel %vm1093_vm1, %v1062_v23, 0 }
 0x25f   : > { %2945 = vmatpush3.bf16.xpose.msra.mxu0 %v1282_v21  ;;  %2950 = vmatprep.subr.bf16.mxu1 %v3574_v9  ;;  %v3159_v38 = vunpack.i.l.bf16 %v3158_v31  ;;  %v3160_v47 = vunpack.i.h.bf16 %v3158_v31 }
 0x260   : > { %2956 = vmatprep.subr.bf16.mxu0 %v3574_v9  ;;  %v1063_v25 = vpack.c.bf16 %v3154_v20, %v3154_v20  ;;  %v1064_v40 = vpack.c.bf16 %v3155_v28, %v3155_v28 }
 0x261   : > { %v1035_v44 = vpack.c.bf16 %v3159_v38, %v3159_v38  ;;  %v1036_v49 = vpack.c.bf16 %v3160_v47, %v3160_v47 }
 0x262   : > { %v1374_v34 = vsel %vm1093_vm1, %v1063_v25, 0  ;;  %v1420_v45 = vsel %vm1093_vm1, %v1064_v40, 0 }
 0x265   : > { %2941 = vmatmul.mubr.msk.bf16.vlgmr.msra.gmra.mrb[16].mxu1 %vm1093_vm1, %v1032_v26 }
 0x266   : > { %2947 = vmatmul.mubr.msk.bf16.vlgmr.msra.gmra.mrb[4].mxu0 %vm1093_vm1, %v1033_v27  ;;  %2951 = vmatpush3.bf16.xpose.msra.mxu1 %v1328_v32 }
 0x267   : > { %2957 = vmatpush3.bf16.xpose.msra.mxu0 %v1374_v34  ;;  %2952 = vmatprep.mubr.msk.bf16.mxu1 %vm3575_vm0, %v3574_v9 }
 0x268   : > { %2958 = vmatprep.mubr.msk.bf16.mxu0 %vm3575_vm0, %v3574_v9  ;;  %2962 = vmatprep.subr.bf16.mxu1 %v3574_v9 }
 0x269   : > { %2968 = vmatprep.subr.bf16.mxu0 %v3574_v9 }
 0x26d   : > { %2953 = vmatmul.mubr.msk.bf16.vlgmr.msra.gmra.mrb[20].mxu1 %vm1093_vm1, %v1034_v42 }
 0x26e   : > { %2959 = vmatmul.mubr.msk.bf16.vlgmr.msra.gmra.mrb[8].mxu0 %vm1093_vm1, %v1035_v44  ;;  %2963 = vmatpush3.bf16.xpose.msra.mxu1 %v1420_v45 }
 0x26f   : > { %2964 = vmatprep.mubr.msk.bf16.mxu1 %vm3575_vm0, %v3574_v9  ;;  %2974 = vmatprep.subr.bf16.mxu1 %v3574_v9 }
 0x270   : > { %2969 = vmatpush3.bf16.msra.mxu0 %v1564_v46  ;;  %2970 = vmatprep.mubr.msk.bf16.mxu0 %vm3575_vm0, %v3574_v9 }
 0x271   : > { %2980 = vmatprep.subr.bf16.mxu0 %v3574_v9 }
 0x275   : > { %2965 = vmatmul.mubr.msk.bf16.vlgmr.msra.gmra.mrb[24].mxu1 %vm1093_vm1, %v1036_v49 }
 0x276   : > { %2975 = vmatpush3.bf16.msra.mxu1 %v1610_v50  ;;  %2976 = vmatprep.mubr.msk.bf16.mxu1 %vm3575_vm0, %v3574_v9 }
 0x277   : > { %2986 = vmatprep.subr.bf16.mxu1 %v3574_v9 }
 0x2bd   : > { %v1134_v51 = vpop.f32.mrb[4].mxu1 }
 0x2be   : > { %v2924_v52 = vpop.f32.mrb[5].mxu1  ;;  %v1463_v53 = vsel %vm1462_vm3, %v1134_v51, -inf }
 0x2bf   : > { %1464 = vmax.xlane.f32.xlu1 %v1463_v53  ;;  %v1137_v54 = vpop.f32.mrb[6].mxu1 }
 0x2c0   : > { %v2925_v55 = vpop.f32.mrb[7].mxu1 }
 0x2c5   : > { %v1180_v56 = vpop.f32.mrb[8].mxu1 }
 0x2c6   : > { %v2930_v57 = vpop.f32.mrb[9].mxu1  ;;  %v1466_v58 = vsel %vm1462_vm3, %v1180_v56, -inf }
 0x2c7   : > { %1467 = vmax.xlane.f32.xlu0 %v1466_v58  ;;  %v1183_v59 = vpop.f32.mrb[10].mxu1 }
 0x2c8   : > { %v2931_v60 = vpop.f32.mrb[11].mxu1 }
 0x330   : > { %v1226_v61 = vpop.f32.mrb[12].mxu1 }
 0x331   : > { %v2936_v62 = vpop.f32.mrb[13].mxu1  ;;  %v1469_v63 = vsel %vm1462_vm3, %v1226_v61, -inf }
 0x332   : > { %1470 = vmax.xlane.f32.xlu0 %v1469_v63  ;;  %v1229_v0 = vpop.f32.mrb[14].mxu1 }
 0x333   : > { %v2937_v1 = vpop.f32.mrb[15].mxu1 }
 0x338   : > { %v1272_v2 = vpop.f32.mrb[16].mxu1 }
 0x339   : > { %v2942_v3 = vpop.f32.mrb[17].mxu1  ;;  %v1318_v4 = vpop.f32.mrb[4].mxu0  ;;  %v1472_v5 = vsel %vm1462_vm3, %v1272_v2, -inf }
 0x33a   : > { %v2948_v6 = vpop.f32.mrb[5].mxu0  ;;  %1473 = vmax.xlane.f32.xlu1 %v1472_v5  ;;  %v1275_v7 = vpop.f32.mrb[18].mxu1  ;;  %v1475_v10 = vsel %vm1462_vm3, %v1318_v4, -inf }
 0x33b   : > { %v1321_v11 = vpop.f32.mrb[6].mxu0  ;;  %1476 = vmax.xlane.f32.xlu0 %v1475_v10  ;;  %v2943_v12 = vpop.f32.mrb[19].mxu1 }
 0x33c   : > { %v2949_v13 = vpop.f32.mrb[7].mxu0 }
 0x340   : > { %v4122_v14 = vpop.f32.mrb[20].mxu1 }
 0x341   : > { %v2954_v15 = vpop.f32.mrb[21].mxu1  ;;  %v1410_v16 = vpop.f32.mrb[8].mxu0  ;;  %v1478_v17 = vsel %vm1462_vm3, %v4122_v14, -inf }
 0x342   : > { %v2960_v18 = vpop.f32.mrb[9].mxu0  ;;  %1479 = vmax.xlane.f32.xlu1 %v1478_v17  ;;  %v1367_v19 = vpop.f32.mrb[22].mxu1  ;;  %v1481_v20 = vsel %vm1462_vm3, %v1410_v16, -inf }
 0x343   : > { %v1413_v21 = vpop.f32.mrb[10].mxu0  ;;  %1482 = vmax.xlane.f32.xlu0 %v1481_v20  ;;  %v2955_v22 = vpop.f32.mrb[23].mxu1 }
 0x344   : > { %v2961_v23 = vpop.f32.mrb[11].mxu0 }
 0x348   : > { %v4127_v24 = vpop.f32.mrb[24].mxu1 }
 0x349   : > { %v2966_v25 = vpop.f32.mrb[25].mxu1  ;;  %v1484_v26 = vsel %vm1462_vm3, %v4127_v24, -inf }
 0x34a   : > { %1485 = vmax.xlane.f32.xlu1 %v1484_v26  ;;  %v1459_v27 = vpop.f32.mrb[26].mxu1 }
 0x34b   : > { %v2967_v28 = vpop.f32.mrb[27].mxu1 }
 0x34c   : > { %v1465_v31 = vpop.xlane.xlu1 %1464 }
 0x34d   : > { %v1487_v32 = vsub.f32 %v1134_v51, %v1465_v31 }
 0x34f   : > { %v1495_v34 = vmul.f32 1.442695, %v1487_v32 }
 0x351   : > { %3271 = vpow2.f32 %v1495_v34 }
 0x354   : > { %v1468_v35 = vpop.xlane.xlu0 %1467 }
 0x355   : > { %v1488_v38 = vsub.f32 %v1180_v56, %v1468_v35 }
 0x357   : > { %v1497_v40 = vmul.f32 1.442695, %v1488_v38 }
 0x359   : > { %3273 = vpow2.f32 %v1497_v40 }
 0x35b   : > { %v3272_v41 = vpop.eup %3271 }
 0x35c   : > { %v1511_v42 = vsel %vm1462_vm3, %v3272_v41, 0.0 }
 0x35d   : > { %1512 = vadd.xlane.f32.xlu0 %v1511_v42 }
 0x363   : > { %v3274_v44 = vpop.eup %3273 }
 0x364   : > { %v1514_v45 = vsel %vm1462_vm3, %v3274_v44, 0.0 }
 0x365   : > { %1515 = vadd.xlane.f32.xlu1 %v1514_v45 }
 0x3bf   : > { %v1471_v46 = vpop.xlane.xlu0 %1470 }
 0x3c0   : > { %v1489_v47 = vsub.f32 %v1226_v61, %v1471_v46 }
 0x3c2   : > { %v1499_v48 = vmul.f32 1.442695, %v1489_v47 }
 0x3c4   : > { %3275 = vpow2.f32 %v1499_v48 }
 0x3c7   : > { %v1474_v49 = vpop.xlane.xlu1 %1473 }
 0x3c8   : > { %v1490_v50 = vsub.f32 %v1272_v2, %v1474_v49  ;;  %v1477_v51 = vpop.xlane.xlu0 %1476  ;;  %v3166_v2 = vpack.i.bf16 %v4098_v43, %v4086_v33 }
 0x3c9   : > { %v1491_v52 = vsub.f32 %v1318_v4, %v1477_v51 }
 0x3ca   : > { %v1501_v53 = vmul.f32 1.442695, %v1490_v50 }
 0x3cb   : > { %v1503_v54 = vmul.f32 1.442695, %v1491_v52 }
 0x3cc   : > { %3277 = vpow2.f32 %v1501_v53 }
 0x3cd   : > { %3279 = vpow2.f32 %v1503_v54 }
 0x3ce   : > { %v4133_v55 = vpop.eup %3275 }
 0x3cf   : > { %v1517_v56 = vsel %vm1462_vm3, %v4133_v55, 0.0  ;;  %v1480_v3 = vpop.xlane.xlu1 %1479 }
 0x3d0   : > { %1518 = vadd.xlane.f32.xlu0 %v1517_v56  ;;  %v1483_v57 = vpop.xlane.xlu0 %1482  ;;  %v1492_v11 = vsub.f32 %v4122_v14, %v1480_v3 }
 0x3d1   : > { %v1493_v58 = vsub.f32 %v1410_v16, %v1483_v57 }
 0x3d2   : > { %v1505_v13 = vmul.f32 1.442695, %v1492_v11 }
 0x3d3   : > { %v1507_v59 = vmul.f32 1.442695, %v1493_v58 }
 0x3d5   : > { %3281 = vpow2.f32 %v1507_v59 }
 0x3d6   : > { %v3278_v60 = vpop.eup %3277 }
 0x3d7   : > { %v4137_v61 = vpop.eup %3279  ;;  %v1520_v62 = vsel %vm1462_vm3, %v3278_v60, 0.0  ;;  %v1486_v5 = vpop.xlane.xlu1 %1485 }
 0x3d8   : > { %1521 = vadd.xlane.f32.xlu1 %v1520_v62  ;;  %v1523_v63 = vsel %vm1462_vm3, %v4137_v61, 0.0  ;;  %v1494_v33 = vsub.f32 %v4127_v24, %v1486_v5 }
 0x3d9   : > { %1524 = vadd.xlane.f32.xlu0 %v1523_v63 }
 0x3da   : > { %v1509_v16 = vmul.f32 1.442695, %v1494_v33 }
 0x3df   : > { %v4142_v0 = vpop.eup %3281 }
 0x3e0   : > { %v1529_v1 = vsel %vm1462_vm3, %v4142_v0, 0.0 }
 0x3e1   : > { %1530 = vadd.xlane.f32.xlu0 %v1529_v1 }
 0x3e9   : > { %3167 = vrot.lane.b32.xlu1 %v3166_v2, %s3577_s1 }
 0x3ea   : > { %v1513_v4 = vpop.xlane.xlu0 %1512 }
 0x3eb   : > { %3283 = vrcp.f32 %v1513_v4 }
 0x3f2   : > { %v1516_v6 = vpop.xlane.xlu1 %1515 }
 0x3f3   : > { %3285 = vrcp.f32 %v1516_v6 }
 0x3f4   : > { %3287 = vpow2.f32 %v1505_v13 }
 0x3f5   : > { %v3284_v7 = vpop.eup %3283  ;;  %3289 = vpow2.f32 %v1509_v16 }
 0x3f6   : > { %v1543_v10 = vmul.f32 %v3284_v7, %v3272_v41 }
 0x3f7   : > { %3162 = vrot.lane.b32.xlu0 %v3166_v2, %s3576_s0 }
 0x3f8   : > { %v1551_v12 = vpack.c.bf16 %v1543_v10, %v1543_v10 }
 0x3fa   : > { %2971 = vmatmul.mubr.msk.bf16.vlgmr.msra.gmra.mrb[12].mxu0 %vm1462_vm3, %v1551_v12 }
 0x3fb   : > { %2982 = vmatprep.mubr.msk.bf16.mxu0 %vm3575_vm0, %v3574_v9 }
 0x3fd   : > { %v3286_v43 = vpop.eup %3285 }
 0x3fe   : > { %v1544_v15 = vmul.f32 %v3286_v43, %v3274_v44  ;;  %v4158_v14 = vpop.eup %3287 }
 0x3ff   : > { %v1526_v18 = vsel %vm1462_vm3, %v4158_v14, 0.0  ;;  %v4162_v19 = vpop.eup %3289 }
 0x400   : > { %v1552_v17 = vpack.c.bf16 %v1544_v15, %v1544_v15  ;;  %v1532_v20 = vsel %vm1462_vm3, %v4162_v19, 0.0 }
 0x402   : > { %2977 = vmatmul.mubr.msk.bf16.vlgmr.msra.gmra.mrb[28].mxu1 %vm1462_vm3, %v1552_v17 }
 0x403   : > { %2988 = vmatprep.mubr.msk.bf16.mxu1 %vm3575_vm0, %v3574_v9 }
 0x40d   : > { %1527 = vadd.xlane.f32.xlu1 %v1526_v18  ;;  %v3224_v18 = vld [vmem:[%s3988_s14 + $0x8] sm:$0xff]  }
 0x411   : > { %1533 = vadd.xlane.f32.xlu1 %v1532_v20 }
 0x422   : > { %3172 = vrot.lane.b32.xlu1 %v3166_v2, %s3578_s4 }
 0x45d   : > { %v1519_v21 = vpop.xlane.xlu0 %1518 }
 0x45e   : > { %3291 = vrcp.f32 %v1519_v21 }
 0x465   : > { %v1522_v22 = vpop.xlane.xlu1 %1521 }
 0x466   : > { %3293 = vrcp.f32 %v1522_v22  ;;  %v1525_v23 = vpop.xlane.xlu0 %1524 }
 0x467   : > { %3295 = vrcp.f32 %v1525_v23 }
 0x468   : > { %v3292_v26 = vpop.eup %3291 }
 0x469   : > { %v3168_v25 = vpop.permute.xlu1 %3167  ;;  %v1545_v38 = vmul.f32 %v3292_v26, %v4133_v55  ;;  %v3226_v26 = vld [vmem:[%s3988_s14 + $0x18] sm:$0xff]  }
 0x46a   : > { %v3170_v31 = vunpack.i.h.bf16 %v3168_v25  ;;  %v3169_v32 = vunpack.i.l.bf16 %v3168_v25 }
 0x46b   : > { %v1553_v48 = vpack.c.bf16 %v1545_v38, %v1545_v38 }
 0x46c   : > { %v1090_v44 = vpack.c.bf16 %v3170_v31, %v3170_v31  ;;  %v1089_v45 = vpack.c.bf16 %v3169_v32, %v3169_v32  ;;  %v3227_v31 = vld [vmem:[%s3988_s14 + $0x20] sm:$0xff]  }
 0x46e   : > { %v1531_v24 = vpop.xlane.xlu0 %1530  ;;  %v1748_v51 = vsel %vm1562_vm2, %v1089_v45, 0  ;;  %v1794_v52 = vsel %vm1562_vm2, %v1090_v44, 0 }
 0x46f   : > { %3297 = vrcp.f32 %v1531_v24 }
 0x470   : > { %v3294_v27 = vpop.eup %3293 }
 0x471   : > { %v1546_v40 = vmul.f32 %v3294_v27, %v3278_v60  ;;  %v3296_v50 = vpop.eup %3295 }
 0x472   : > { %v3163_v28 = vpop.permute.xlu0 %3162  ;;  %v1547_v53 = vmul.f32 %v3296_v50, %v4137_v61 }
 0x473   : > { %v3165_v34 = vunpack.i.h.bf16 %v3163_v28  ;;  %v3164_v35 = vunpack.i.l.bf16 %v3163_v28  ;;  %v1554_v49 = vpack.c.bf16 %v1546_v40, %v1546_v40  ;;  %v3228_v40 = vld [vmem:[%s3988_s14 + $0x28] sm:$0xff]  }
 0x474   : > { %v1555_v54 = vpack.c.bf16 %v1547_v53, %v1547_v53 }
 0x475   : > { %v1088_v41 = vpack.c.bf16 %v3165_v34, %v3165_v34  ;;  %v1087_v42 = vpack.c.bf16 %v3164_v35, %v3164_v35 }
 0x477   : > { %v1656_v46 = vsel %vm1562_vm2, %v1087_v42, 0  ;;  %v1702_v47 = vsel %vm1562_vm2, %v1088_v41, 0  ;;  %v3229_v41 = vld [vmem:[%s3988_s14 + $0x30] sm:$0xff]   ;;  %v3230_v42 = vld [vmem:[%s3988_s14 + $0x38] sm:$0xff]  }
 0x478   : > { %2981 = vmatpush3.bf16.msra.mxu0 %v1656_v46  ;;  %2987 = vmatpush3.bf16.msra.mxu1 %v1702_v47 }
 0x479   : > { %2992 = vmatprep.subr.bf16.mxu0 %v3574_v9  ;;  %2998 = vmatprep.subr.bf16.mxu1 %v3574_v9  ;;  %v3298_v57 = vpop.eup %3297 }
 0x47a   : > { %v1549_v62 = vmul.f32 %v3298_v57, %v4142_v0 }
 0x47b   : > { %2983 = vmatmul.mubr.msk.bf16.vlgmr.msra.gmra.mrb[16].mxu0 %vm1462_vm3, %v1553_v48  ;;  %2989 = vmatmul.mubr.msk.bf16.vlgmr.msra.gmra.mrb[32].mxu1 %vm1462_vm3, %v1554_v49 }
 0x47c   : > { %2993 = vmatpush3.bf16.msra.mxu0 %v1748_v51  ;;  %2999 = vmatpush3.bf16.msra.mxu1 %v1794_v52  ;;  %v1557_v6 = vpack.c.bf16 %v1549_v62, %v1549_v62 }
 0x47d   : > { %2994 = vmatprep.mubr.msk.bf16.mxu0 %vm3575_vm0, %v3574_v9  ;;  %3004 = vmatprep.subr.bf16.mxu0 %v3574_v9 }
 0x47e   : > { %3000 = vmatprep.mubr.msk.bf16.mxu1 %vm3575_vm0, %v3574_v9  ;;  %3010 = vmatprep.subr.bf16.mxu1 %v3574_v9 }
 0x483   : > { %2995 = vmatmul.mubr.msk.bf16.vlgmr.msra.gmra.mrb[20].mxu0 %vm1462_vm3, %v1555_v54 }
 0x484   : > { %3006 = vmatprep.mubr.msk.bf16.mxu0 %vm3575_vm0, %v3574_v9 }
 0x49a   : > { %v1528_v55 = vpop.xlane.xlu1 %1527 }
 0x49b   : > { %3299 = vrcp.f32 %v1528_v55 }
 0x49e   : > { %v1534_v56 = vpop.xlane.xlu1 %1533 }
 0x49f   : > { %3301 = vrcp.f32 %v1534_v56 }
 0x4a2   : > { %v3173_v58 = vpop.permute.xlu1 %3172 }
 0x4a3   : > { %v3175_v59 = vunpack.i.h.bf16 %v3173_v58  ;;  %v3174_v60 = vunpack.i.l.bf16 %v3173_v58 }
 0x4a5   : > { %v3300_v61 = vpop.eup %3299  ;;  %v1091_v63 = vpack.c.bf16 %v3174_v60, %v3174_v60  ;;  %v1092_v2 = vpack.c.bf16 %v3175_v59, %v3175_v59 }
 0x4a6   : > { %v1548_v1 = vmul.f32 %v3300_v61, %v4158_v14  ;;  %v3223_v14 = vld [vmem:[%s3988_s14] sm:$0xff]  }
 0x4a7   : > { %v1840_v3 = vsel %vm1562_vm2, %v1091_v63, 0  ;;  %v1886_v7 = vsel %vm1562_vm2, %v1092_v2, 0 }
 0x4a8   : > { %3005 = vmatpush3.bf16.msra.mxu0 %v1840_v3  ;;  %v1556_v4 = vpack.c.bf16 %v1548_v1, %v1548_v1 }
 0x4a9   : > { %v3302_v5 = vpop.eup %3301  ;;  %3016 = vmatprep.subr.bf16.mxu0 %v3574_v9 }
 0x4aa   : > { %3001 = vmatmul.mubr.msk.bf16.vlgmr.msra.gmra.mrb[36].mxu1 %vm1462_vm3, %v1556_v4  ;;  %v1550_v0 = vmul.f32 %v3302_v5, %v4162_v19  ;;  %v3225_v19 = vld [vmem:[%s3988_s14 + $0x10] sm:$0xff]  }
 0x4ab   : > { %3011 = vmatpush3.bf16.msra.mxu1 %v1886_v7  ;;  %3007 = vmatmul.mubr.msk.bf16.vlgmr.msra.gmra.mrb[24].mxu0 %vm1462_vm3, %v1557_v6 }
 0x4ac   : > { %3012 = vmatprep.mubr.msk.bf16.mxu1 %vm3575_vm0, %v3574_v9  ;;  %3032 = vmatprep.mubr.msk.bf16.mxu0 %vm3575_vm0, %v3574_v9  ;;  %v1558_v10 = vpack.c.bf16 %v1550_v0, %v1550_v0 }
 0x4ad   : > { %3017 = vmatpush3.bf16.msra.mxu0 %v3223_v14 }
 0x4ae   : > { %3018 = vmatprep.subr.bf16.mxu0 %v3574_v9 }
 0x4b1   : > { %3019 = vmatpush3.bf16.msra.mxu0 %v3224_v18  ;;  %v3231_v18 = vld [vmem:[%s3990_s11] ss:$8 sps:$4 sm:$0xff]  }
 0x4b2   : > { %3013 = vmatmul.mubr.msk.bf16.vlgmr.msra.gmra.mrb[40].mxu1 %vm1462_vm3, %v1558_v10  ;;  %3020 = vmatprep.subr.bf16.mxu0 %v3574_v9 }
 0x4b3   : > { %2257 = vmatprep.mubr.bf16.mxu1 %v3573_v8 }
 0x4b5   : > { %3021 = vmatpush3.bf16.msra.mxu0 %v3225_v19  ;;  %v3233_v19 = vld [vmem:[%s3990_s11 + $0x4] ss:$8 sps:$4 sm:$0xff]  }
 0x4b6   : > { %3022 = vmatprep.subr.bf16.mxu0 %v3574_v9  ;;  %2225 = vmatprep.subr.bf16.mxu1 %v3233_v19 }
 0x4b7   : > { %2226 = vmatpush1.bf16.msra.mxu1 %v3231_v18 }
 0x4b9   : > { %3023 = vmatpush3.bf16.msra.mxu0 %v3226_v26 }
 0x4ba   : > { %3024 = vmatprep.subr.bf16.mxu0 %v3574_v9 }
 0x4bd   : > { %3025 = vmatpush3.bf16.msra.mxu0 %v3227_v31  ;;  %v3242_v31 = vld [vmem:[%s3990_s11 + $0x34] ss:$8 sps:$4 sm:$0xff]  }
 0x4be   : > { %3026 = vmatprep.subr.bf16.mxu0 %v3574_v9 }
 0x4c1   : > { %3027 = vmatpush3.bf16.msra.mxu0 %v3228_v40  ;;  %v3246_v40 = vld [vmem:[%s3990_s11 + $0x50] ss:$8 sps:$4 sm:$0xff]  }
 0x4c2   : > { %3028 = vmatprep.subr.bf16.mxu0 %v3574_v9 }
 0x4c5   : > { %3029 = vmatpush3.bf16.msra.mxu0 %v3229_v41  ;;  %v3251_v41 = vld [vmem:[%s3990_s11 + $0x64] ss:$8 sps:$4 sm:$0xff]  }
 0x4c6   : > { %3030 = vmatprep.subr.bf16.mxu0 %v3574_v9 }
 0x4c9   : > { %3031 = vmatpush3.bf16.msra.mxu0 %v3230_v42  ;;  %v3249_v42 = vld [vmem:[%s3990_s11 + $0x60] ss:$8 sps:$4 sm:$0xff]  }
 0x4cd   : > { %v4200_v11 = vpop.f32.mrb[12].mxu0 }
 0x4ce   : > { %v2972_v12 = vpop.f32.mrb[13].mxu0 }
 0x4cf   : > { %v1603_v13 = vpop.f32.mrb[14].mxu0  ;;  %v2775_v12 = vld [vmem:[%s4426_s27] ss:$0 sm:$0xff] }
 0x4d0   : > { %v2973_v33 = vpop.f32.mrb[15].mxu0 }
 0x4d5   : > { %v4202_v43 = vpop.f32.mrb[28].mxu1 }
 0x4d6   : > { %v2978_v15 = vpop.f32.mrb[29].mxu1 }
 0x4d7   : > { %v1649_v16 = vpop.f32.mrb[30].mxu1 }
 0x4d8   : > { %v2979_v17 = vpop.f32.mrb[31].mxu1 }
 0x54e   : > { %v1692_v8 = vpop.f32.mrb[16].mxu0  ;;  %v1738_v20 = vpop.f32.mrb[32].mxu1 }
 0x54f   : > { %v3176_v21 = vpack.i.bf16 %v1738_v20, %v1692_v8  ;;  %v2984_v22 = vpop.f32.mrb[17].mxu0  ;;  %v2990_v23 = vpop.f32.mrb[33].mxu1  ;;  %v3236_v8 = vld [vmem:[%s3990_s11 + $0x14] ss:$8 sps:$4 sm:$0xff]   ;;  %v3234_v20 = vld [vmem:[%s3990_s11 + $0x10] ss:$8 sps:$4 sm:$0xff]  }
 0x550   : > { %v1695_v24 = vpop.f32.mrb[18].mxu0  ;;  %v1741_v25 = vpop.f32.mrb[34].mxu1  ;;  %2227 = vmatprep.subr.bf16.mxu1 %v3236_v8 }
 0x551   : > { %v2985_v27 = vpop.f32.mrb[19].mxu0  ;;  %3177 = vrot.lane.b32.xlu0 %v3176_v21, %s3578_s4  ;;  %v2991_v28 = vpop.f32.mrb[35].mxu1  ;;  %2228 = vmatpush1.bf16.msra.mxu1 %v3234_v20 }
 0x552   : > { %v3239_v27 = vld [vmem:[%s3990_s11 + $0x24] ss:$8 sps:$4 sm:$0xff]   ;;  %v3237_v28 = vld [vmem:[%s3990_s11 + $0x20] ss:$8 sps:$4 sm:$0xff]  }
 0x553   : > { %2229 = vmatprep.subr.bf16.mxu1 %v3239_v27 }
 0x555   : > { %2230 = vmatpush1.bf16.msra.mxu1 %v3237_v28 }
 0x556   : > { %v1784_v32 = vpop.f32.mrb[20].mxu0  ;;  %2231 = vmatprep.subr.bf16.mxu1 %v3242_v31 }
 0x557   : > { %v2996_v34 = vpop.f32.mrb[21].mxu0 }
 0x558   : > { %v1787_v35 = vpop.f32.mrb[22].mxu0  ;;  %v3245_v34 = vld [vmem:[%s3990_s11 + $0x44] ss:$8 sps:$4 sm:$0xff]  }
 0x559   : > { %v2997_v38 = vpop.f32.mrb[23].mxu0  ;;  %v3243_v35 = vld [vmem:[%s3990_s11 + $0x40] ss:$8 sps:$4 sm:$0xff]  }
 0x55a   : > { %v3248_v38 = vld [vmem:[%s3990_s11 + $0x54] ss:$8 sps:$4 sm:$0xff]  }
 0x57d   : > { %v1830_v44 = vpop.f32.mrb[36].mxu1 }
 0x57e   : > { %v3181_v45 = vpack.i.bf16 %v1830_v44, %v1784_v32  ;;  %v3002_v46 = vpop.f32.mrb[37].mxu1  ;;  %v1876_v47 = vpop.f32.mrb[24].mxu0  ;;  %v3240_v32 = vld [vmem:[%s3990_s11 + $0x30] ss:$8 sps:$4 sm:$0xff]   ;;  %v3254_v44 = vld [vmem:[%s3990_s11 + $0x74] ss:$8 sps:$4 sm:$0xff]  }
 0x57f   : > { %v1833_v48 = vpop.f32.mrb[38].mxu1  ;;  %v3008_v49 = vpop.f32.mrb[25].mxu0  ;;  %2232 = vmatpush1.bf16.msra.mxu1 %v3240_v32  ;;  %v3255_v46 = vld [vmem:[%s3992_s19 + $0x40] sm:$0xff]  }
 0x580   : > { %v1879_v50 = vpop.f32.mrb[26].mxu0  ;;  %3182 = vrot.lane.b32.xlu1 %v3181_v45, %s3577_s1  ;;  %v3003_v51 = vpop.f32.mrb[39].mxu1  ;;  %2233 = vmatprep.subr.bf16.mxu1 %v3245_v34  ;;  %v3252_v45 = vld [vmem:[%s3990_s11 + $0x70] ss:$8 sps:$4 sm:$0xff]   ;;  %v3257_v48 = vld [vmem:[%s3992_s19 + $0x48] sm:$0xff]  }
 0x581   : > { %v3009_v52 = vpop.f32.mrb[27].mxu0  ;;  %2878 = vmatprep.subr.bf16.mxu0 %v3255_v46  ;;  %v3258_v49 = vld [vmem:[%s3992_s19 + $0x8] sm:$0xff]   ;;  %v3259_v50 = vld [vmem:[%s3992_s19 + $0x50] sm:$0xff]  }
 0x582   : > { %v3260_v51 = vld [vmem:[%s3992_s19 + $0x10] sm:$0xff]   ;;  %v3261_v52 = vld [vmem:[%s3992_s19 + $0x58] sm:$0xff]  }
 0x583   : > { %2234 = vmatpush1.bf16.msra.mxu1 %v3243_v35 }
 0x584   : > { %2235 = vmatprep.subr.bf16.mxu1 %v3248_v38 }
 0x585   : > { %v1922_v53 = vpop.f32.mrb[40].mxu1 }
 0x586   : > { %v3186_v54 = vpack.i.bf16 %v1922_v53, %v1876_v47  ;;  %v3014_v55 = vpop.f32.mrb[41].mxu1  ;;  %v3256_v47 = vld [vmem:[%s3992_s19] sm:$0xff]   ;;  %v3262_v53 = vld [vmem:[%s3992_s19 + $0x18] sm:$0xff]  }
 0x587   : > { %v1925_v56 = vpop.f32.mrb[42].mxu1  ;;  %2236 = vmatpush1.bf16.msra.mxu1 %v3246_v40  ;;  %v3264_v55 = vld [vmem:[%s3992_s19 + $0x20] sm:$0xff]  }
 0x588   : > { %3187 = vrot.lane.b32.xlu0 %v3186_v54, %s3576_s0  ;;  %v3015_v9 = vpop.f32.mrb[43].mxu1  ;;  %2237 = vmatprep.subr.bf16.mxu1 %v3251_v41  ;;  %v3263_v54 = vld [vmem:[%s3992_s19 + $0x60] sm:$0xff]   ;;  %v3265_v56 = vld [vmem:[%s3992_s19 + $0x68] sm:$0xff]   ;;  %s3579_s0 = smov [#allocation12]  }
 0x589   : > { %s2502_s1 = sshll.u32 %s3579_s0, 4  ;;  %s2503_s1 = int_to_ptr.vmem [resolvable:$true] %s2502_s1 }
 0x58a   : > { %p3494_p3 = scmp.lt.s32.totalorder %s2503_s1, %s2503_s1 }
 0x58b   : > { %2238 = vmatpush1.bf16.msra.mxu1 %v3249_v42 }
 0x58c   : > { %2239 = vmatprep.subr.bf16.mxu1 %v3254_v44 }
 0x58f   : > { %2240 = vmatpush1.bf16.msra.mxu1 %v3252_v45 }
 0x5c3   : > { %v3178_v57 = vpop.permute.xlu0 %3177 }
 0x5c4   : > { %v3180_v59 = vunpack.i.h.bf16 %v3178_v57  ;;  %v3179_v60 = vunpack.i.l.bf16 %v3178_v57 }
 0x5c6   : > { %v1953_v1 = vsel %vm1093_vm1, %v4202_v43, %v3180_v59  ;;  %v1952_v2 = vsel %vm1093_vm1, %v4200_v11, %v3179_v60 }
 0x5f2   : > { %v3183_v58 = vpop.permute.xlu1 %3182 }
 0x5f3   : > { %v3185_v61 = vunpack.i.h.bf16 %v3183_v58  ;;  %v3184_v62 = vunpack.i.l.bf16 %v3183_v58 }
 0x5f5   : > { %v1956_v5 = vsel %vm1954_vm4, %v1953_v1, %v3185_v61  ;;  %v1955_v6 = vsel %vm1954_vm4, %v1952_v2, %v3184_v62 }
 0x5fa   : > { %v3188_v63 = vpop.permute.xlu0 %3187 }
 0x5fb   : > { %v3190_v3 = vunpack.i.h.bf16 %v3188_v63  ;;  %v3189_v4 = vunpack.i.l.bf16 %v3188_v63  ;;  %v2784_v63 = vld [vmem:[%s4427_s13] ss:$0 sm:$0xff] }
 0x5fd   : > { %v1959_v7 = vsel %vm1957_vm5, %v1956_v5, %v3190_v3  ;;  %v1958_v0 = vsel %vm1957_vm5, %v1955_v6, %v3189_v4  ;;  %v2785_v5 = vld [vmem:[%s4429_s16] ss:$0 sm:$0xff] }
 0x5fe   : > { %v1960_v10 = vpack.c.bf16 %v1959_v7, %v1958_v0 }
 0x600   : > { %3033 = vmatmul.mubr.bf16.vlgmr.msra.gmra.mrb[28].mxu0 %v1960_v10 }
 0x601   : > { %2879 = vmatpush3.bf16.msra.mxu0 %v3256_v47 }
 0x602   : > { %2880 = vmatprep.subr.bf16.mxu0 %v3257_v48 }
 0x605   : > { %2881 = vmatpush3.bf16.msra.mxu0 %v3258_v49 }
 0x606   : > { %2882 = vmatprep.subr.bf16.mxu0 %v3259_v50 }
 0x609   : > { %2883 = vmatpush3.bf16.msra.mxu0 %v3260_v51 }
 0x60a   : > { %2884 = vmatprep.subr.bf16.mxu0 %v3261_v52 }
 0x60d   : > { %2885 = vmatpush3.bf16.msra.mxu0 %v3262_v53 }
 0x60e   : > { %2886 = vmatprep.subr.bf16.mxu0 %v3263_v54 }
 0x611   : > { %2887 = vmatpush3.bf16.msra.mxu0 %v3264_v55 }
 0x612   : > { %2888 = vmatprep.subr.bf16.mxu0 %v3265_v56 }
 0x6d3   : > { %v2066_v13 = vpop.f32.mrb[28].mxu0 }
 0x6d4   : > { %v2067_v33 = vadd.f32 %v2775_v12, %v2066_v13  ;;  %v3034_v11 = vpop.f32.mrb[29].mxu0  ;;  %v3267_v13 = vld [vmem:[%s3992_s19 + $0x70] sm:$0xff]  }
 0x6d5   : > { %v2069_v43 = vpop.f32.mrb[30].mxu0  ;;  %v3269_v11 = vld [vmem:[%s3992_s19 + $0x78] sm:$0xff]  }
 0x6d6   : > { %v2070_v15 = vadd.f32 %v2775_v12, %v2069_v43  ;;  %v3035_v16 = vpop.f32.mrb[31].mxu0  ;;  %v2073_v17 = vadd.f32 %v2067_v33, %v4022_v29  ;;  %v3266_v12 = vld [vmem:[%s3992_s19 + $0x28] sm:$0xff]   ;;  %v3268_v33 = vld [vmem:[%s3992_s19 + $0x30] sm:$0xff]   ;;  %v3270_v43 = vld [vmem:[%s3992_s19 + $0x38] sm:$0xff]  }
 0x6d7   : > { %2889 = vmatpush3.bf16.msra.mxu0 %v3266_v12 }
 0x6d8   : > { %2077 = vadd.xlane.f32.xlu1 %v2073_v17  ;;  %v2074_v14 = vadd.f32 %v2070_v15, %v4024_v30  ;;  %2890 = vmatprep.subr.bf16.mxu0 %v3267_v13  ;;  %v2133_v15 = vld [vmem:[%s3974_s2] sm:$0x3] }
 0x6d9   : > { %v2138_v16 = vrot.slane %v2133_v15, %v782_v37 }
 0x6da   : > { %2079 = vadd.xlane.f32.xlu0 %v2074_v14 }
 0x6db   : > { %2891 = vmatpush3.bf16.msra.mxu0 %v3268_v33 }
 0x6dc   : > { %2892 = vmatprep.subr.bf16.mxu0 %v3269_v11 }
 0x6df   : > { %2893 = vmatpush3.bf16.msra.mxu0 %v3270_v43 }
 0x765   : > { %v2078_v21 = vpop.xlane.xlu1 %2077 }
 0x766   : > { %v2082_v22 = vmul.f32 0.0078125, %v2078_v21 }
 0x767   : > { %v2080_v23 = vpop.xlane.xlu0 %2079 }
 0x768   : > { %v4237_v29 = vsub.f32 %v2073_v17, %v2082_v22  ;;  %v2083_v30 = vmul.f32 0.0078125, %v2080_v23  ;;  %v2142_v17 = vrot.slane %v2133_v15, %v786_v39 }
 0x76a   : > { %v4239_v24 = vsub.f32 %v2074_v14, %v2083_v30  ;;  %v2086_v25 = vmul.f32 %v4237_v29, %v4237_v29 }
 0x76c   : > { %2088 = vadd.xlane.f32.xlu0 %v2086_v25  ;;  %v2087_v26 = vmul.f32 %v4239_v24, %v4239_v24 }
 0x76e   : > { %2090 = vadd.xlane.f32.xlu1 %v2087_v26 }
 0x7f9   : > { %v2089_v9 = vpop.xlane.xlu0 %2088 }
 0x7fa   : > { %v2092_v57 = vmul.f32 0.0078125, %v2089_v9 }
 0x7fb   : > { %v2091_v58 = vpop.xlane.xlu1 %2090 }
 0x7fc   : > { %v2094_v59 = vadd.f32 1e-05, %v2092_v57  ;;  %v2093_v60 = vmul.f32 0.0078125, %v2091_v58  ;;  %v2819_v57 = vld [vmem:[%s726_s29] ss:$0 sm:$0xff]  ;;  %s3487_s29 = scalar_lea.vmem %s2503_s1, 256 }
 0x7fd   : > { %p3488_p1 = scmp.ne.s32.totalorder %s2503_s1, %s3487_s29  ;;  %p3495_p10 = scmp.lt.s32.totalorder %s3487_s29, %s3487_s29 }
 0x7fe   : > { %3303 = vrsqrt.f32 %v2094_v59  ;;  %v2095_v61 = vadd.f32 1e-05, %v2093_v60  ;;  %v2820_v60 = vld [vmem:[%s729_s26] ss:$0 sm:$0xff] }
 0x7ff   : > { %p3489_p8 = pnand %p3488_p1, %p3085_p5  ;;  %p3496_p9 = por %p3495_p10, %p3494_p3 }
 0x800   : > { %3305 = vrsqrt.f32 %v2095_v61 }
 0x801   : > { %p3490_p11 = pneg %p3489_p8 }
 0x803   : > { %p3497_p12 = pnand %p3496_p9, %p3490_p11 }
 0x808   : > { %v3304_v62 = vpop.eup %3303 }
 0x809   : > { %v2098_v1 = vmul.f32 %v3304_v62, %v4237_v29 }
 0x80a   : > { %v3306_v2 = vpop.eup %3305 }
 0x80b   : > { %v2099_v3 = vmul.f32 %v3306_v2, %v4239_v24  ;;  %v2106_v4 = vmul.f32 %v2784_v63, %v2098_v1 }
 0x80d   : > { %v2107_v6 = vmul.f32 %v2784_v63, %v2099_v3  ;;  %v2114_v7 = vadd.f32 %v2785_v5, %v2106_v4 }
 0x80f   : > { %v2115_v0 = vadd.f32 %v2785_v5, %v2107_v6 }
 0x811   : > { %v2116_v10 = vpack.c.bf16 %v2115_v0, %v2114_v7 }
 0x813   : > { %2258 = vmatmul.mubr.bf16.vlgmr.msra.gmra.mrb[44].mxu1 %v2116_v10 }
 0x8e6   : > { %v2259_v14 = vpop.f32.mrb[44].mxu1 }
 0x8e7   : > { %v2260_v18 = vadd.f32 %v2259_v14, %v2138_v16  ;;  %v2261_v19 = vpop.f32.mrb[45].mxu1 }
 0x8e8   : > { %v2262_v8 = vadd.f32 %v2261_v19, %v2142_v17  ;;  %v2263_v20 = vpop.f32.mrb[46].mxu1 }
 0x8e9   : > { %v2264_v21 = vadd.f32 %v2263_v20, %v2138_v16  ;;  %v2265_v22 = vpop.f32.mrb[47].mxu1  ;;  %v2268_v29 = vmax.f32 %v2260_v18, 0.0 }
 0x8ea   : > { %v2266_v23 = vadd.f32 %v2265_v22, %v2142_v17  ;;  %v2269_v24 = vmax.f32 %v2262_v8, 0.0 }
 0x8eb   : > { %v2270_v30 = vmax.f32 %v2264_v21, 0.0 }
 0x8ec   : > { %v2271_v25 = vmax.f32 %v2266_v23, 0.0 }
 0x8ed   : > { %v2272_v26 = vpack.c.bf16 %v2270_v30, %v2268_v29 }
 0x8ee   : > { %v2273_v27 = vpack.c.bf16 %v2271_v25, %v2269_v24 }
 0x8f0   : > { %2441 = vmatprep.mubr.bf16.mxu0 %v2273_v27 }
 0x8f1   : > { %2442 = vmatmul.mubr.bf16.vlgmr.msra.gmra.mrb[32].mxu0 %v2272_v26 }
 0x9c4   : > { %v2894_v37 = vpop.f32.mrb[32].mxu0 }
 0x9c5   : > { %v2895_v39 = vpop.f32.mrb[33].mxu0 }
 0x9c6   : > { %v2896_v28 = vadd.f32 %v2895_v39, %v2894_v37  ;;  %v2897_v31 = vpop.f32.mrb[34].mxu0 }
 0x9c7   : > { %v2898_v32 = vpop.f32.mrb[35].mxu0 }
 0x9c8   : > { %v2444_v34 = vadd.f32 %v2896_v28, %v2802_v36  ;;  %v2899_v35 = vadd.f32 %v2898_v32, %v2897_v31 }
 0x9ca   : > { %v2447_v38 = vadd.f32 %v2899_v35, %v2802_v36  ;;  %v2450_v40 = vadd.f32 %v2444_v34, %v2114_v7 }
 0x9cc   : > { %2454 = vadd.xlane.f32.xlu0 %v2450_v40  ;;  %v2451_v41 = vadd.f32 %v2447_v38, %v2115_v0 }
 0x9ce   : > { %2456 = vadd.xlane.f32.xlu1 %v2451_v41 }
 0xa59   : > { %v2455_v42 = vpop.xlane.xlu0 %2454 }
 0xa5a   : > { %v2458_v44 = vmul.f32 0.0078125, %v2455_v42 }
 0xa5b   : > { %v2457_v45 = vpop.xlane.xlu1 %2456 }
 0xa5c   : > { %v2460_v46 = vsub.f32 %v2450_v40, %v2458_v44  ;;  %v2459_v47 = vmul.f32 0.0078125, %v2457_v45 }
 0xa5e   : > { %v2461_v48 = vsub.f32 %v2451_v41, %v2459_v47  ;;  %v2462_v49 = vmul.f32 %v2460_v46, %v2460_v46 }
 0xa60   : > { %2464 = vadd.xlane.f32.xlu0 %v2462_v49  ;;  %v2463_v50 = vmul.f32 %v2461_v48, %v2461_v48 }
 0xa62   : > { %2466 = vadd.xlane.f32.xlu1 %v2463_v50 }
 0xaed   : > { %v2465_v51 = vpop.xlane.xlu0 %2464 }
 0xaee   : > { %v2468_v52 = vmul.f32 0.0078125, %v2465_v51 }
 0xaef   : > { %v2467_v53 = vpop.xlane.xlu1 %2466 }
 0xaf0   : > { %v2470_v54 = vadd.f32 1e-05, %v2468_v52  ;;  %v2469_v55 = vmul.f32 0.0078125, %v2467_v53 }
 0xaf2   : > { %3307 = vrsqrt.f32 %v2470_v54  ;;  %v2471_v56 = vadd.f32 1e-05, %v2469_v55 }
 0xaf4   : > { %3309 = vrsqrt.f32 %v2471_v56 }
 0xafc   : > { %v3308_v9 = vpop.eup %3307 }
 0xafd   : > { %v2474_v58 = vmul.f32 %v3308_v9, %v2460_v46 }
 0xafe   : > { %v3310_v59 = vpop.eup %3309 }
 0xaff   : > { %v2475_v61 = vmul.f32 %v3310_v59, %v2461_v48  ;;  %v2482_v62 = vmul.f32 %v2819_v57, %v2474_v58 }
 0xb01   : > { %v2483_v63 = vmul.f32 %v2819_v57, %v2475_v61  ;;  %v2490_v1 = vadd.f32 %v2820_v60, %v2482_v62 }
 0xb03   : > { %v2491_v2 = vadd.f32 %v2820_v60, %v2483_v63  ;;  %2492 = vst [vmem:[#allocation2] sm:$0xff] %v2490_v1  ;;  %2494 = vst [vmem:[#allocation12] sm:$0xff] %v2490_v1 }
 0xb05   : > { %2493 = vst [vmem:[#allocation2 + $0x8] sm:$0xff] %v2491_v2  ;;  %2495 = vst [vmem:[#allocation12 + $0x8] sm:$0xff] %v2491_v2 }
 0xb06   : > { %3500 = shalt.err (!%p3497_p12)
}
 0xb07   : > { %s4433_s4 = sld [smem:[#allocation30_spill]] }
 0xb0d   : > { %s3501_s3 = scalar_lea.hbm %s4433_s4, 256 }
 0xb0e   : > { %p3502_p2 = scmp.ne.s32.totalorder %s4433_s4, %s3501_s3  ;;  %p3507_p0 = scmp.lt.u32.totalorder %s3501_s3, %s4433_s4 }
 0xb10   : > { %p3503_p6 = pnand %p3502_p2, %p3085_p5 }
 0xb12   : > { %p3504_p4 = pneg %p3503_p6 }
 0xb14   : > { %p3509_p7 = pnand %p3507_p0, %p3504_p4 }
 0xb16   : > { %3512 = shalt.err (!%p3509_p7)
}
 0xb17   : > { %s3580_s13 = smov 128   ;;  %s3581_s7 = smov 8  }
 0xb18   : > { %3057 = dma.vmem_to_hbm [thread:$0]  (%p3085_p5), %s2503_s1, 256, %s4433_s4, [#allocation5], %s3580_s13, %s3580_s13, %s3581_s7  }
 0xb19   : > { %3542 = dma.done.wait (%p3085_p5), [#allocation5], 256  }
 0xb1a   : > { %3544 = vsyncadd (%p3085_p5), [#allocation5], 4294967040 }
 0xb1b PF: > { %s4434_s16 = sld [smem:[#allocation18_spill]]  ;;  %s4435_s2 = sld [smem:[#allocation17_spill]] }
 0xb1c   : > { %s4436_s15 = sld [smem:[#allocation19_spill]]  ;;  %s4437_s29 = smov %s3551_s30 }
 0xb21   : > { %p24_p13 = scmp.ge.s32.totalorder %s4434_s16, 4   ;;  %s4438_s30 = smov %s4435_s2 }
 0xb23   :  { %26 = sbr.rel (!%p24_p13) target bundleno = 16 (0x10), region = 181 }
 0xb2a   :  { %2518 = vsyncpa [#allocation4], 1 }
 0xb2b   :  { %2520 = vsyncpa [#allocation4 + $0x1], 1 }
 0xb2c   :  { %2521 = vsyncpa [#allocation7], 1 }
 0xb2d   :  { %2522 = vsyncpa [#allocation5], 1 }
 0xb2e   :  { %2524 = vsyncpa [#allocation5 + $0x1], 1 }

</bundles_post_ra>
